<compile_context>
chip_gen: v5e
topology: v5e:2x2
jax: 0.10.0
libtpu: 0.0.40
codegen_flags: <defaults>
</compile_context>

<pallas_src>
import math
import functools

import jax
import jax.numpy as jnp
from jax import lax
from jax.experimental import pallas as pl
from jax.experimental.pallas import tpu as pltpu

# ----------------------------- config (small) -------------------------------
VOCAB_SIZE = 16
MAX_SEQ_LEN = 64
D_MODEL = 32
N_LAYERS = 2
N_HEADS = 4
D_FF = 64
BATCH = 2
SEQ = 8
LN_EPS = 1e-5


# ------------------------------ Pallas kernel -------------------------------
def _layer_norm(x, g, b):
    mu = jnp.mean(x, axis=-1, keepdims=True)
    var = jnp.mean((x - mu) ** 2, axis=-1, keepdims=True)
    return (x - mu) * lax.rsqrt(var + LN_EPS) * g + b


def fused_forward_kernel(
    ids_ref,      # (B*S, 1) int32
    pe_ref,       # (B*S, D) f32   positional encoding, pre-tiled per batch
    emb_ref,      # (V, D)   f32
    wqkv_ref,     # (L, D, 3D)
    wo_ref,       # (L, D, D)
    w1_ref,       # (L, D, F)
    w2_ref,       # (L, F, D)
    vecd_ref,     # (L, 9, D)  rows: [b_q, b_k, b_v, b_o, g1, be1, b2, g2, be2]
    b1_ref,       # (L, 1, F)
    lnf_ref,      # (2, D)     rows: [gamma_f, beta_f]
    wlm_ref,      # (D, V)
    out_ref,      # (B*S, V)
    *, n_layers: int, n_heads: int, batch: int, seq: int,
):
    V, D = emb_ref.shape
    BS = batch * seq
    dk = D // n_heads
    scale = 1.0 / math.sqrt(dk)

    # ---- embedding (one-hot matmul on the MXU) + positional encoding -------
    ids = ids_ref[...]                                             # (BS, 1)
    onehot = (ids == lax.broadcasted_iota(jnp.int32, (BS, V), 1)).astype(jnp.float32)
    x = jnp.dot(onehot, emb_ref[...], preferred_element_type=jnp.float32) + pe_ref[...]

    # ---- additive causal mask, built once (torch.tril / masked_fill) -------
    row = lax.broadcasted_iota(jnp.int32, (seq, seq), 0)
    col = lax.broadcasted_iota(jnp.int32, (seq, seq), 1)
    mask_add = jnp.where(row >= col, 0.0, -10000.0)[None, :, :]    # (1, S, S)

    # ---- transformer blocks (static unroll; everything VMEM-resident) ------
    for l in range(n_layers):
        vec = vecd_ref[l]                                          # (9, D)
        wqkv = wqkv_ref[l]                                         # (D, 3D)
        wo = wo_ref[l]                                             # (D, D)

        # fused Q/K/V projection: one (BS, D) @ (D, 3D) MXU push
        qkv = jnp.dot(x, wqkv, preferred_element_type=jnp.float32)  # (BS, 3D)
        q = (qkv[:, 0:D] + vec[0:1, :]) * scale        # fold 1/sqrt(dk) into q
        k = qkv[:, D:2 * D] + vec[1:2, :]
        v = qkv[:, 2 * D:3 * D] + vec[2:3, :]
        qb = q.reshape(batch, seq, D)
        kb = k.reshape(batch, seq, D)
        vb = v.reshape(batch, seq, D)

        # multi-head attention; Wo applied per head-row-slice so no lane concat
        attn = jnp.zeros((BS, D), jnp.float32)
        for h in range(n_heads):                       # short static loop
            sl = slice(h * dk, (h + 1) * dk)
            s = jnp.einsum("bqd,bkd->bqk", qb[:, :, sl], kb[:, :, sl],
                           preferred_element_type=jnp.float32)
            s = s + mask_add
            s = s - jnp.max(s, axis=-1, keepdims=True)
            p = jnp.exp(s)
            p = p * pl.reciprocal(jnp.sum(p, axis=-1, keepdims=True), approx=True)
            ctx = jnp.einsum("bqk,bkd->bqd", p, vb[:, :, sl],
                             preferred_element_type=jnp.float32)   # (B, S, dk)
            attn = attn + jnp.dot(ctx.reshape(BS, dk), wo[sl, :],
                                  preferred_element_type=jnp.float32)
        attn = attn + vec[3:4, :]

        # residual + LayerNorm 1  (dropout = identity in eval mode)
        x1 = _layer_norm(x + attn, vec[4:5, :], vec[5:6, :])

        # feed-forward: relu(x @ W1 + b1) @ W2 + b2
        h1 = jnp.maximum(
            jnp.dot(x1, w1_ref[l], preferred_element_type=jnp.float32) + b1_ref[l],
            0.0)
        ff = jnp.dot(h1, w2_ref[l], preferred_element_type=jnp.float32) + vec[6:7, :]

        # residual + LayerNorm 2
        x = _layer_norm(x1 + ff, vec[7:8, :], vec[8:9, :])

    # ---- final LayerNorm + lm_head ------------------------------------------
    lnf = lnf_ref[...]
    xn = _layer_norm(x, lnf[0:1, :], lnf[1:2, :])
    out_ref[...] = jnp.dot(xn, wlm_ref[...], preferred_element_type=jnp.float32)


# ------------------------------- wrapper -------------------------------------
def sinusoidal_pe(max_len, d_model):
    pos = jnp.arange(max_len, dtype=jnp.float32)[:, None]
    div = jnp.exp(
        jnp.arange(0, d_model, 2, dtype=jnp.float32) * (-math.log(10000.0) / d_model)
    )
    pe = jnp.zeros((max_len, d_model), dtype=jnp.float32)
    pe = pe.at[:, 0::2].set(jnp.sin(pos * div))
    pe = pe.at[:, 1::2].set(jnp.cos(pos * div))
    return pe


def counting_transformer_forward(input_ids, params):
    """Returns logits [B, S, V] (labels=None path of CountingTransformer.forward)."""
    emb, wqkv, wo, w1, w2, vecd, b1, lnf, wlm = params
    B, S = input_ids.shape
    V, D = emb.shape
    pe_bs = jnp.tile(sinusoidal_pe(MAX_SEQ_LEN, D)[:S], (B, 1))     # (B*S, D)
    ids = input_ids.reshape(B * S, 1).astype(jnp.int32)

    args = (ids, pe_bs, emb, wqkv, wo, w1, w2, vecd, b1, lnf, wlm)
    logits_flat = pl.pallas_call(
        functools.partial(fused_forward_kernel,
                          n_layers=N_LAYERS, n_heads=N_HEADS, batch=B, seq=S),
        out_shape=jax.ShapeDtypeStruct((B * S, V), jnp.float32),
        in_specs=[pl.BlockSpec(memory_space=pltpu.MemorySpace.VMEM)] * len(args),
        out_specs=pl.BlockSpec(memory_space=pltpu.MemorySpace.VMEM),
    )(*args)
    # lane-dense (B*S, V) slab out of the kernel; reshape is free in the wrapper
    return logits_flat.reshape(B, S, V)
    # TODO(synk): CrossEntropy loss branch (labels != None) not needed for forward-only kernel.


# --------------------------- params (synthetic init) -------------------------
def init_params(key):
    """Deterministic synthetic init matching the module's _init_weights, packed
    into stacked/fused layouts consumed by the fused kernel."""
    keys = iter(jax.random.split(key, 2 + N_LAYERS * 6))

    def lin_w(k, fan_in, fan_out):
        return 0.02 * jax.random.normal(k, (fan_in, fan_out), dtype=jnp.float32)

    emb = 0.02 * jax.random.normal(next(keys), (VOCAB_SIZE, D_MODEL), dtype=jnp.float32)

    wqkv_l, wo_l, w1_l, w2_l, vecd_l, b1_l = [], [], [], [], [], []
    zD = jnp.zeros((D_MODEL,), jnp.float32)
    oD = jnp.ones((D_MODEL,), jnp.float32)
    for _ in range(N_LAYERS):
        wq = lin_w(next(keys), D_MODEL, D_MODEL)
        wk = lin_w(next(keys), D_MODEL, D_MODEL)
        wv = lin_w(next(keys), D_MODEL, D_MODEL)
        wo = lin_w(next(keys), D_MODEL, D_MODEL)
        w1 = lin_w(next(keys), D_MODEL, D_FF)
        w2 = lin_w(next(keys), D_FF, D_MODEL)
        wqkv_l.append(jnp.concatenate([wq, wk, wv], axis=1))        # (D, 3D)
        wo_l.append(wo)
        w1_l.append(w1)
        w2_l.append(w2)
        # rows: [b_q, b_k, b_v, b_o, gamma1, beta1, b2, gamma2, beta2]
        vecd_l.append(jnp.stack([zD, zD, zD, zD, oD, zD, zD, oD, zD], axis=0))
        b1_l.append(jnp.zeros((1, D_FF), jnp.float32))

    lnf = jnp.stack([oD, zD], axis=0)                               # (2, D)
    wlm = lin_w(next(keys), D_MODEL, VOCAB_SIZE)                    # no bias

    return (emb,
            jnp.stack(wqkv_l), jnp.stack(wo_l), jnp.stack(w1_l), jnp.stack(w2_l),
            jnp.stack(vecd_l), jnp.stack(b1_l),
            lnf, wlm)


# ---------------------------------- main --------------------------------------
if __name__ == "__main__":
    key = jax.random.PRNGKey(0)
    k_ids, k_params = jax.random.split(key)
    input_ids = jax.random.randint(k_ids, (BATCH, SEQ), 0, VOCAB_SIZE, dtype=jnp.int32)
    params = init_params(k_params)

    forward = jax.jit(counting_transformer_forward)
    logits = jax.block_until_ready(forward(input_ids, params))

    assert logits.shape == (BATCH, SEQ, VOCAB_SIZE), logits.shape
    assert bool(jnp.all(jnp.isfinite(logits)))
    print("KERNEL_OK")
</pallas_src>

<mosaic_0001>
module attributes {stable_mosaic.version = 11 : i64} {
  func.func @fused_forward_kernel(%arg0: memref<16x1xi32, #tpu.memory_space<vmem>>, %arg1: memref<16x32xf32, #tpu.memory_space<vmem>>, %arg2: memref<16x32xf32, #tpu.memory_space<vmem>>, %arg3: memref<2x32x96xf32, #tpu.memory_space<vmem>>, %arg4: memref<2x32x32xf32, #tpu.memory_space<vmem>>, %arg5: memref<2x32x64xf32, #tpu.memory_space<vmem>>, %arg6: memref<2x64x32xf32, #tpu.memory_space<vmem>>, %arg7: memref<2x9x32xf32, #tpu.memory_space<vmem>>, %arg8: memref<2x1x64xf32, #tpu.memory_space<vmem>>, %arg9: memref<2x32xf32, #tpu.memory_space<vmem>>, %arg10: memref<32x16xf32, #tpu.memory_space<vmem>>, %arg11: memref<16x16xf32, #tpu.memory_space<vmem>>) attributes {dimension_semantics = [], scalar_prefetch = 0 : i64, scratch_operands = 0 : i64, tpu.core_type = #tpu.core_type<tc>} {
    %c0 = arith.constant 0 : index
    %c0_0 = arith.constant 0 : index
    %0 = vector.load %arg0[%c0, %c0_0] : memref<16x1xi32, #tpu.memory_space<vmem>>, vector<16x1xi32>
    %1 = tpu.iota {dimensions = array<i32: 1>} : vector<16x16xi32>
    %2 = vector.broadcast %0 : vector<16x1xi32> to vector<16x16xi32>
    %3 = arith.cmpi eq, %2, %1 : vector<16x16xi32>
    %4 = arith.extui %3 : vector<16x16xi1> to vector<16x16xi32>
    %5 = arith.sitofp %4 : vector<16x16xi32> to vector<16x16xf32>
    %c0_1 = arith.constant 0 : index
    %c0_2 = arith.constant 0 : index
    %6 = vector.load %arg2[%c0_1, %c0_2] : memref<16x32xf32, #tpu.memory_space<vmem>>, vector<16x32xf32>
    %cst = arith.constant dense<0.000000e+00> : vector<16x32xf32>
    %7 = tpu.matmul %5, %6, %cst {dimension_numbers = #tpu.dot_dimension_numbers<[1], [0], [0], [1], [0, 0, 1, 1], [], []>} : vector<16x16xf32>, vector<16x32xf32>, vector<16x32xf32> -> vector<16x32xf32>
    %c0_3 = arith.constant 0 : index
    %c0_4 = arith.constant 0 : index
    %8 = vector.load %arg1[%c0_3, %c0_4] : memref<16x32xf32, #tpu.memory_space<vmem>>, vector<16x32xf32>
    %9 = arith.addf %7, %8 : vector<16x32xf32>
    %10 = tpu.iota {dimensions = array<i32: 0>} : vector<8x8xi32>
    %11 = tpu.iota {dimensions = array<i32: 1>} : vector<8x8xi32>
    %12 = arith.cmpi sge, %10, %11 : vector<8x8xi32>
    %cst_5 = arith.constant 0.000000e+00 : f32
    %cst_6 = arith.constant -1.000000e+04 : f32
    %13 = vector.broadcast %cst_5 : f32 to vector<8x8xf32>
    %14 = vector.broadcast %cst_6 : f32 to vector<8x8xf32>
    %15 = arith.select %12, %13, %14 : vector<8x8xi1>, vector<8x8xf32>
    %16 = vector.shape_cast %15 : vector<8x8xf32> to vector<1x8x8xf32>
    %c0_7 = arith.constant 0 : index
    %c0_8 = arith.constant 0 : index
    %c0_9 = arith.constant 0 : index
    %17 = vector.load %arg7[%c0_7, %c0_8, %c0_9] : memref<2x9x32xf32, #tpu.memory_space<vmem>>, vector<1x9x32xf32>
    %18 = vector.shape_cast %17 : vector<1x9x32xf32> to vector<9x32xf32>
    %c0_10 = arith.constant 0 : index
    %c0_11 = arith.constant 0 : index
    %c0_12 = arith.constant 0 : index
    %19 = vector.load %arg3[%c0_10, %c0_11, %c0_12] : memref<2x32x96xf32, #tpu.memory_space<vmem>>, vector<1x32x96xf32>
    %20 = vector.shape_cast %19 : vector<1x32x96xf32> to vector<32x96xf32>
    %c0_13 = arith.constant 0 : index
    %c0_14 = arith.constant 0 : index
    %c0_15 = arith.constant 0 : index
    %21 = vector.load %arg4[%c0_13, %c0_14, %c0_15] : memref<2x32x32xf32, #tpu.memory_space<vmem>>, vector<1x32x32xf32>
    %22 = vector.shape_cast %21 : vector<1x32x32xf32> to vector<32x32xf32>
    %cst_16 = arith.constant dense<0.000000e+00> : vector<16x96xf32>
    %23 = tpu.matmul %9, %20, %cst_16 {dimension_numbers = #tpu.dot_dimension_numbers<[1], [0], [0], [1], [0, 0, 1, 1], [], []>} : vector<16x32xf32>, vector<32x96xf32>, vector<16x96xf32> -> vector<16x96xf32>
    %24 = vector.extract_strided_slice %23 {offsets = [0, 0], sizes = [16, 32], strides = [1, 1]} : vector<16x96xf32> to vector<16x32xf32>
    %25 = vector.extract_strided_slice %18 {offsets = [0, 0], sizes = [1, 32], strides = [1, 1]} : vector<9x32xf32> to vector<1x32xf32>
    %26 = vector.broadcast %25 : vector<1x32xf32> to vector<16x32xf32>
    %27 = arith.addf %24, %26 : vector<16x32xf32>
    %cst_17 = arith.constant 0.353553385 : f32
    %28 = vector.broadcast %cst_17 : f32 to vector<16x32xf32>
    %29 = arith.mulf %27, %28 : vector<16x32xf32>
    %30 = vector.extract_strided_slice %23 {offsets = [0, 32], sizes = [16, 32], strides = [1, 1]} : vector<16x96xf32> to vector<16x32xf32>
    %31 = vector.extract_strided_slice %18 {offsets = [1, 0], sizes = [1, 32], strides = [1, 1]} : vector<9x32xf32> to vector<1x32xf32>
    %32 = vector.broadcast %31 : vector<1x32xf32> to vector<16x32xf32>
    %33 = arith.addf %30, %32 : vector<16x32xf32>
    %34 = vector.extract_strided_slice %23 {offsets = [0, 64], sizes = [16, 32], strides = [1, 1]} : vector<16x96xf32> to vector<16x32xf32>
    %35 = vector.extract_strided_slice %18 {offsets = [2, 0], sizes = [1, 32], strides = [1, 1]} : vector<9x32xf32> to vector<1x32xf32>
    %36 = vector.broadcast %35 : vector<1x32xf32> to vector<16x32xf32>
    %37 = arith.addf %34, %36 : vector<16x32xf32>
    %38 = vector.shape_cast %29 : vector<16x32xf32> to vector<2x8x32xf32>
    %39 = vector.shape_cast %33 : vector<16x32xf32> to vector<2x8x32xf32>
    %40 = vector.shape_cast %37 : vector<16x32xf32> to vector<2x8x32xf32>
    %cst_18 = arith.constant 0.000000e+00 : f32
    %41 = vector.broadcast %cst_18 : f32 to vector<16x32xf32>
    %42 = vector.extract_strided_slice %38 {offsets = [0, 0, 0], sizes = [2, 8, 8], strides = [1, 1, 1]} : vector<2x8x32xf32> to vector<2x8x8xf32>
    %43 = vector.extract_strided_slice %39 {offsets = [0, 0, 0], sizes = [2, 8, 8], strides = [1, 1, 1]} : vector<2x8x32xf32> to vector<2x8x8xf32>
    "tpu.trace_start"() <{level = 10 : i32, message = "bqd,bkd->bqk"}> : () -> ()
    %cst_19 = arith.constant dense<0.000000e+00> : vector<2x8x8xf32>
    %44 = tpu.matmul %42, %43, %cst_19 {dimension_numbers = #tpu.dot_dimension_numbers<[2], [2], [1], [1], [0, 0, 0, 1, 1, 1], [0], [0]>} : vector<2x8x8xf32>, vector<2x8x8xf32>, vector<2x8x8xf32> -> vector<2x8x8xf32>
    "tpu.trace_stop"() : () -> ()
    %45 = vector.broadcast %16 : vector<1x8x8xf32> to vector<2x8x8xf32>
    %46 = arith.addf %44, %45 : vector<2x8x8xf32>
    %cst_20 = arith.constant dense<0xFF800000> : vector<2x8xf32>
    %47 = vector.multi_reduction <maximumf>, %46, %cst_20 [2] : vector<2x8x8xf32> to vector<2x8xf32>
    %48 = vector.shape_cast %47 : vector<2x8xf32> to vector<2x8x1xf32>
    %49 = vector.broadcast %48 : vector<2x8x1xf32> to vector<2x8x8xf32>
    %50 = arith.subf %46, %49 : vector<2x8x8xf32>
    %51 = math.exp %50 : vector<2x8x8xf32>
    %cst_21 = arith.constant dense<0.000000e+00> : vector<2x8xf32>
    %52 = vector.multi_reduction <add>, %51, %cst_21 [2] : vector<2x8x8xf32> to vector<2x8xf32>
    %53 = vector.shape_cast %52 : vector<2x8xf32> to vector<2x8x1xf32>
    %54 = tpu.reciprocal %53 {approx = true} : vector<2x8x1xf32> -> vector<2x8x1xf32>
    %55 = vector.broadcast %54 : vector<2x8x1xf32> to vector<2x8x8xf32>
    %56 = arith.mulf %51, %55 : vector<2x8x8xf32>
    %57 = vector.extract_strided_slice %40 {offsets = [0, 0, 0], sizes = [2, 8, 8], strides = [1, 1, 1]} : vector<2x8x32xf32> to vector<2x8x8xf32>
    "tpu.trace_start"() <{level = 10 : i32, message = "bqk,bkd->bqd"}> : () -> ()
    %cst_22 = arith.constant dense<0.000000e+00> : vector<2x8x8xf32>
    %58 = tpu.matmul %56, %57, %cst_22 {dimension_numbers = #tpu.dot_dimension_numbers<[2], [1], [1], [2], [0, 0, 0, 1, 1, 2], [0], [0]>} : vector<2x8x8xf32>, vector<2x8x8xf32>, vector<2x8x8xf32> -> vector<2x8x8xf32>
    "tpu.trace_stop"() : () -> ()
    %59 = vector.shape_cast %58 : vector<2x8x8xf32> to vector<16x8xf32>
    %60 = vector.extract_strided_slice %22 {offsets = [0, 0], sizes = [8, 32], strides = [1, 1]} : vector<32x32xf32> to vector<8x32xf32>
    %cst_23 = arith.constant dense<0.000000e+00> : vector<16x32xf32>
    %61 = tpu.matmul %59, %60, %cst_23 {dimension_numbers = #tpu.dot_dimension_numbers<[1], [0], [0], [1], [0, 0, 1, 1], [], []>} : vector<16x8xf32>, vector<8x32xf32>, vector<16x32xf32> -> vector<16x32xf32>
    %62 = arith.addf %41, %61 : vector<16x32xf32>
    %63 = vector.extract_strided_slice %38 {offsets = [0, 0, 8], sizes = [2, 8, 8], strides = [1, 1, 1]} : vector<2x8x32xf32> to vector<2x8x8xf32>
    %64 = vector.extract_strided_slice %39 {offsets = [0, 0, 8], sizes = [2, 8, 8], strides = [1, 1, 1]} : vector<2x8x32xf32> to vector<2x8x8xf32>
    "tpu.trace_start"() <{level = 10 : i32, message = "bqd,bkd->bqk"}> : () -> ()
    %cst_24 = arith.constant dense<0.000000e+00> : vector<2x8x8xf32>
    %65 = tpu.matmul %63, %64, %cst_24 {dimension_numbers = #tpu.dot_dimension_numbers<[2], [2], [1], [1], [0, 0, 0, 1, 1, 1], [0], [0]>} : vector<2x8x8xf32>, vector<2x8x8xf32>, vector<2x8x8xf32> -> vector<2x8x8xf32>
    "tpu.trace_stop"() : () -> ()
    %66 = vector.broadcast %16 : vector<1x8x8xf32> to vector<2x8x8xf32>
    %67 = arith.addf %65, %66 : vector<2x8x8xf32>
    %cst_25 = arith.constant dense<0xFF800000> : vector<2x8xf32>
    %68 = vector.multi_reduction <maximumf>, %67, %cst_25 [2] : vector<2x8x8xf32> to vector<2x8xf32>
    %69 = vector.shape_cast %68 : vector<2x8xf32> to vector<2x8x1xf32>
    %70 = vector.broadcast %69 : vector<2x8x1xf32> to vector<2x8x8xf32>
    %71 = arith.subf %67, %70 : vector<2x8x8xf32>
    %72 = math.exp %71 : vector<2x8x8xf32>
    %cst_26 = arith.constant dense<0.000000e+00> : vector<2x8xf32>
    %73 = vector.multi_reduction <add>, %72, %cst_26 [2] : vector<2x8x8xf32> to vector<2x8xf32>
    %74 = vector.shape_cast %73 : vector<2x8xf32> to vector<2x8x1xf32>
    %75 = tpu.reciprocal %74 {approx = true} : vector<2x8x1xf32> -> vector<2x8x1xf32>
    %76 = vector.broadcast %75 : vector<2x8x1xf32> to vector<2x8x8xf32>
    %77 = arith.mulf %72, %76 : vector<2x8x8xf32>
    %78 = vector.extract_strided_slice %40 {offsets = [0, 0, 8], sizes = [2, 8, 8], strides = [1, 1, 1]} : vector<2x8x32xf32> to vector<2x8x8xf32>
    "tpu.trace_start"() <{level = 10 : i32, message = "bqk,bkd->bqd"}> : () -> ()
    %cst_27 = arith.constant dense<0.000000e+00> : vector<2x8x8xf32>
    %79 = tpu.matmul %77, %78, %cst_27 {dimension_numbers = #tpu.dot_dimension_numbers<[2], [1], [1], [2], [0, 0, 0, 1, 1, 2], [0], [0]>} : vector<2x8x8xf32>, vector<2x8x8xf32>, vector<2x8x8xf32> -> vector<2x8x8xf32>
    "tpu.trace_stop"() : () -> ()
    %80 = vector.shape_cast %79 : vector<2x8x8xf32> to vector<16x8xf32>
    %81 = vector.extract_strided_slice %22 {offsets = [8, 0], sizes = [8, 32], strides = [1, 1]} : vector<32x32xf32> to vector<8x32xf32>
    %cst_28 = arith.constant dense<0.000000e+00> : vector<16x32xf32>
    %82 = tpu.matmul %80, %81, %cst_28 {dimension_numbers = #tpu.dot_dimension_numbers<[1], [0], [0], [1], [0, 0, 1, 1], [], []>} : vector<16x8xf32>, vector<8x32xf32>, vector<16x32xf32> -> vector<16x32xf32>
    %83 = arith.addf %62, %82 : vector<16x32xf32>
    %84 = vector.extract_strided_slice %38 {offsets = [0, 0, 16], sizes = [2, 8, 8], strides = [1, 1, 1]} : vector<2x8x32xf32> to vector<2x8x8xf32>
    %85 = vector.extract_strided_slice %39 {offsets = [0, 0, 16], sizes = [2, 8, 8], strides = [1, 1, 1]} : vector<2x8x32xf32> to vector<2x8x8xf32>
    "tpu.trace_start"() <{level = 10 : i32, message = "bqd,bkd->bqk"}> : () -> ()
    %cst_29 = arith.constant dense<0.000000e+00> : vector<2x8x8xf32>
    %86 = tpu.matmul %84, %85, %cst_29 {dimension_numbers = #tpu.dot_dimension_numbers<[2], [2], [1], [1], [0, 0, 0, 1, 1, 1], [0], [0]>} : vector<2x8x8xf32>, vector<2x8x8xf32>, vector<2x8x8xf32> -> vector<2x8x8xf32>
    "tpu.trace_stop"() : () -> ()
    %87 = vector.broadcast %16 : vector<1x8x8xf32> to vector<2x8x8xf32>
    %88 = arith.addf %86, %87 : vector<2x8x8xf32>
    %cst_30 = arith.constant dense<0xFF800000> : vector<2x8xf32>
    %89 = vector.multi_reduction <maximumf>, %88, %cst_30 [2] : vector<2x8x8xf32> to vector<2x8xf32>
    %90 = vector.shape_cast %89 : vector<2x8xf32> to vector<2x8x1xf32>
    %91 = vector.broadcast %90 : vector<2x8x1xf32> to vector<2x8x8xf32>
    %92 = arith.subf %88, %91 : vector<2x8x8xf32>
    %93 = math.exp %92 : vector<2x8x8xf32>
    %cst_31 = arith.constant dense<0.000000e+00> : vector<2x8xf32>
    %94 = vector.multi_reduction <add>, %93, %cst_31 [2] : vector<2x8x8xf32> to vector<2x8xf32>
    %95 = vector.shape_cast %94 : vector<2x8xf32> to vector<2x8x1xf32>
    %96 = tpu.reciprocal %95 {approx = true} : vector<2x8x1xf32> -> vector<2x8x1xf32>
    %97 = vector.broadcast %96 : vector<2x8x1xf32> to vector<2x8x8xf32>
    %98 = arith.mulf %93, %97 : vector<2x8x8xf32>
    %99 = vector.extract_strided_slice %40 {offsets = [0, 0, 16], sizes = [2, 8, 8], strides = [1, 1, 1]} : vector<2x8x32xf32> to vector<2x8x8xf32>
    "tpu.trace_start"() <{level = 10 : i32, message = "bqk,bkd->bqd"}> : () -> ()
    %cst_32 = arith.constant dense<0.000000e+00> : vector<2x8x8xf32>
    %100 = tpu.matmul %98, %99, %cst_32 {dimension_numbers = #tpu.dot_dimension_numbers<[2], [1], [1], [2], [0, 0, 0, 1, 1, 2], [0], [0]>} : vector<2x8x8xf32>, vector<2x8x8xf32>, vector<2x8x8xf32> -> vector<2x8x8xf32>
    "tpu.trace_stop"() : () -> ()
    %101 = vector.shape_cast %100 : vector<2x8x8xf32> to vector<16x8xf32>
    %102 = vector.extract_strided_slice %22 {offsets = [16, 0], sizes = [8, 32], strides = [1, 1]} : vector<32x32xf32> to vector<8x32xf32>
    %cst_33 = arith.constant dense<0.000000e+00> : vector<16x32xf32>
    %103 = tpu.matmul %101, %102, %cst_33 {dimension_numbers = #tpu.dot_dimension_numbers<[1], [0], [0], [1], [0, 0, 1, 1], [], []>} : vector<16x8xf32>, vector<8x32xf32>, vector<16x32xf32> -> vector<16x32xf32>
    %104 = arith.addf %83, %103 : vector<16x32xf32>
    %105 = vector.extract_strided_slice %38 {offsets = [0, 0, 24], sizes = [2, 8, 8], strides = [1, 1, 1]} : vector<2x8x32xf32> to vector<2x8x8xf32>
    %106 = vector.extract_strided_slice %39 {offsets = [0, 0, 24], sizes = [2, 8, 8], strides = [1, 1, 1]} : vector<2x8x32xf32> to vector<2x8x8xf32>
    "tpu.trace_start"() <{level = 10 : i32, message = "bqd,bkd->bqk"}> : () -> ()
    %cst_34 = arith.constant dense<0.000000e+00> : vector<2x8x8xf32>
    %107 = tpu.matmul %105, %106, %cst_34 {dimension_numbers = #tpu.dot_dimension_numbers<[2], [2], [1], [1], [0, 0, 0, 1, 1, 1], [0], [0]>} : vector<2x8x8xf32>, vector<2x8x8xf32>, vector<2x8x8xf32> -> vector<2x8x8xf32>
    "tpu.trace_stop"() : () -> ()
    %108 = vector.broadcast %16 : vector<1x8x8xf32> to vector<2x8x8xf32>
    %109 = arith.addf %107, %108 : vector<2x8x8xf32>
    %cst_35 = arith.constant dense<0xFF800000> : vector<2x8xf32>
    %110 = vector.multi_reduction <maximumf>, %109, %cst_35 [2] : vector<2x8x8xf32> to vector<2x8xf32>
    %111 = vector.shape_cast %110 : vector<2x8xf32> to vector<2x8x1xf32>
    %112 = vector.broadcast %111 : vector<2x8x1xf32> to vector<2x8x8xf32>
    %113 = arith.subf %109, %112 : vector<2x8x8xf32>
    %114 = math.exp %113 : vector<2x8x8xf32>
    %cst_36 = arith.constant dense<0.000000e+00> : vector<2x8xf32>
    %115 = vector.multi_reduction <add>, %114, %cst_36 [2] : vector<2x8x8xf32> to vector<2x8xf32>
    %116 = vector.shape_cast %115 : vector<2x8xf32> to vector<2x8x1xf32>
    %117 = tpu.reciprocal %116 {approx = true} : vector<2x8x1xf32> -> vector<2x8x1xf32>
    %118 = vector.broadcast %117 : vector<2x8x1xf32> to vector<2x8x8xf32>
    %119 = arith.mulf %114, %118 : vector<2x8x8xf32>
    %120 = vector.extract_strided_slice %40 {offsets = [0, 0, 24], sizes = [2, 8, 8], strides = [1, 1, 1]} : vector<2x8x32xf32> to vector<2x8x8xf32>
    "tpu.trace_start"() <{level = 10 : i32, message = "bqk,bkd->bqd"}> : () -> ()
    %cst_37 = arith.constant dense<0.000000e+00> : vector<2x8x8xf32>
    %121 = tpu.matmul %119, %120, %cst_37 {dimension_numbers = #tpu.dot_dimension_numbers<[2], [1], [1], [2], [0, 0, 0, 1, 1, 2], [0], [0]>} : vector<2x8x8xf32>, vector<2x8x8xf32>, vector<2x8x8xf32> -> vector<2x8x8xf32>
    "tpu.trace_stop"() : () -> ()
    %122 = vector.shape_cast %121 : vector<2x8x8xf32> to vector<16x8xf32>
    %123 = vector.extract_strided_slice %22 {offsets = [24, 0], sizes = [8, 32], strides = [1, 1]} : vector<32x32xf32> to vector<8x32xf32>
    %cst_38 = arith.constant dense<0.000000e+00> : vector<16x32xf32>
    %124 = tpu.matmul %122, %123, %cst_38 {dimension_numbers = #tpu.dot_dimension_numbers<[1], [0], [0], [1], [0, 0, 1, 1], [], []>} : vector<16x8xf32>, vector<8x32xf32>, vector<16x32xf32> -> vector<16x32xf32>
    %125 = arith.addf %104, %124 : vector<16x32xf32>
    %126 = vector.extract_strided_slice %18 {offsets = [3, 0], sizes = [1, 32], strides = [1, 1]} : vector<9x32xf32> to vector<1x32xf32>
    %127 = vector.broadcast %126 : vector<1x32xf32> to vector<16x32xf32>
    %128 = arith.addf %125, %127 : vector<16x32xf32>
    %129 = arith.addf %9, %128 : vector<16x32xf32>
    %130 = vector.extract_strided_slice %18 {offsets = [4, 0], sizes = [1, 32], strides = [1, 1]} : vector<9x32xf32> to vector<1x32xf32>
    %131 = vector.extract_strided_slice %18 {offsets = [5, 0], sizes = [1, 32], strides = [1, 1]} : vector<9x32xf32> to vector<1x32xf32>
    %cst_39 = arith.constant dense<0.000000e+00> : vector<16xf32>
    %132 = vector.multi_reduction <add>, %129, %cst_39 [1] : vector<16x32xf32> to vector<16xf32>
    %133 = vector.shape_cast %132 : vector<16xf32> to vector<16x1xf32>
    %cst_40 = arith.constant 3.200000e+01 : f32
    %134 = vector.broadcast %cst_40 : f32 to vector<16x1xf32>
    %135 = arith.divf %133, %134 : vector<16x1xf32>
    %136 = vector.broadcast %135 : vector<16x1xf32> to vector<16x32xf32>
    %137 = arith.subf %129, %136 : vector<16x32xf32>
    %138 = arith.mulf %137, %137 : vector<16x32xf32>
    %cst_41 = arith.constant dense<0.000000e+00> : vector<16xf32>
    %139 = vector.multi_reduction <add>, %138, %cst_41 [1] : vector<16x32xf32> to vector<16xf32>
    %140 = vector.shape_cast %139 : vector<16xf32> to vector<16x1xf32>
    %cst_42 = arith.constant 3.200000e+01 : f32
    %141 = vector.broadcast %cst_42 : f32 to vector<16x1xf32>
    %142 = arith.divf %140, %141 : vector<16x1xf32>
    %143 = vector.broadcast %135 : vector<16x1xf32> to vector<16x32xf32>
    %144 = arith.subf %129, %143 : vector<16x32xf32>
    %cst_43 = arith.constant 9.99999974E-6 : f32
    %145 = vector.broadcast %cst_43 : f32 to vector<16x1xf32>
    %146 = arith.addf %142, %145 : vector<16x1xf32>
    %147 = math.rsqrt %146 : vector<16x1xf32>
    %148 = vector.broadcast %147 : vector<16x1xf32> to vector<16x32xf32>
    %149 = arith.mulf %144, %148 : vector<16x32xf32>
    %150 = vector.broadcast %130 : vector<1x32xf32> to vector<16x32xf32>
    %151 = arith.mulf %149, %150 : vector<16x32xf32>
    %152 = vector.broadcast %131 : vector<1x32xf32> to vector<16x32xf32>
    %153 = arith.addf %151, %152 : vector<16x32xf32>
    %c0_44 = arith.constant 0 : index
    %c0_45 = arith.constant 0 : index
    %c0_46 = arith.constant 0 : index
    %154 = vector.load %arg5[%c0_44, %c0_45, %c0_46] : memref<2x32x64xf32, #tpu.memory_space<vmem>>, vector<1x32x64xf32>
    %155 = vector.shape_cast %154 : vector<1x32x64xf32> to vector<32x64xf32>
    %cst_47 = arith.constant dense<0.000000e+00> : vector<16x64xf32>
    %156 = tpu.matmul %153, %155, %cst_47 {dimension_numbers = #tpu.dot_dimension_numbers<[1], [0], [0], [1], [0, 0, 1, 1], [], []>} : vector<16x32xf32>, vector<32x64xf32>, vector<16x64xf32> -> vector<16x64xf32>
    %c0_48 = arith.constant 0 : index
    %c0_49 = arith.constant 0 : index
    %c0_50 = arith.constant 0 : index
    %157 = vector.load %arg8[%c0_48, %c0_49, %c0_50] : memref<2x1x64xf32, #tpu.memory_space<vmem>>, vector<1x1x64xf32>
    %158 = vector.shape_cast %157 : vector<1x1x64xf32> to vector<1x64xf32>
    %159 = vector.broadcast %158 : vector<1x64xf32> to vector<16x64xf32>
    %160 = arith.addf %156, %159 : vector<16x64xf32>
    %cst_51 = arith.constant 0.000000e+00 : f32
    %161 = vector.broadcast %cst_51 : f32 to vector<16x64xf32>
    %162 = arith.maximumf %160, %161 : vector<16x64xf32>
    %c0_52 = arith.constant 0 : index
    %c0_53 = arith.constant 0 : index
    %c0_54 = arith.constant 0 : index
    %163 = vector.load %arg6[%c0_52, %c0_53, %c0_54] : memref<2x64x32xf32, #tpu.memory_space<vmem>>, vector<1x64x32xf32>
    %164 = vector.shape_cast %163 : vector<1x64x32xf32> to vector<64x32xf32>
    %cst_55 = arith.constant dense<0.000000e+00> : vector<16x32xf32>
    %165 = tpu.matmul %162, %164, %cst_55 {dimension_numbers = #tpu.dot_dimension_numbers<[1], [0], [0], [1], [0, 0, 1, 1], [], []>} : vector<16x64xf32>, vector<64x32xf32>, vector<16x32xf32> -> vector<16x32xf32>
    %166 = vector.extract_strided_slice %18 {offsets = [6, 0], sizes = [1, 32], strides = [1, 1]} : vector<9x32xf32> to vector<1x32xf32>
    %167 = vector.broadcast %166 : vector<1x32xf32> to vector<16x32xf32>
    %168 = arith.addf %165, %167 : vector<16x32xf32>
    %169 = arith.addf %153, %168 : vector<16x32xf32>
    %170 = vector.extract_strided_slice %18 {offsets = [7, 0], sizes = [1, 32], strides = [1, 1]} : vector<9x32xf32> to vector<1x32xf32>
    %171 = vector.extract_strided_slice %18 {offsets = [8, 0], sizes = [1, 32], strides = [1, 1]} : vector<9x32xf32> to vector<1x32xf32>
    %cst_56 = arith.constant dense<0.000000e+00> : vector<16xf32>
    %172 = vector.multi_reduction <add>, %169, %cst_56 [1] : vector<16x32xf32> to vector<16xf32>
    %173 = vector.shape_cast %172 : vector<16xf32> to vector<16x1xf32>
    %cst_57 = arith.constant 3.200000e+01 : f32
    %174 = vector.broadcast %cst_57 : f32 to vector<16x1xf32>
    %175 = arith.divf %173, %174 : vector<16x1xf32>
    %176 = vector.broadcast %175 : vector<16x1xf32> to vector<16x32xf32>
    %177 = arith.subf %169, %176 : vector<16x32xf32>
    %178 = arith.mulf %177, %177 : vector<16x32xf32>
    %cst_58 = arith.constant dense<0.000000e+00> : vector<16xf32>
    %179 = vector.multi_reduction <add>, %178, %cst_58 [1] : vector<16x32xf32> to vector<16xf32>
    %180 = vector.shape_cast %179 : vector<16xf32> to vector<16x1xf32>
    %cst_59 = arith.constant 3.200000e+01 : f32
    %181 = vector.broadcast %cst_59 : f32 to vector<16x1xf32>
    %182 = arith.divf %180, %181 : vector<16x1xf32>
    %183 = vector.broadcast %175 : vector<16x1xf32> to vector<16x32xf32>
    %184 = arith.subf %169, %183 : vector<16x32xf32>
    %cst_60 = arith.constant 9.99999974E-6 : f32
    %185 = vector.broadcast %cst_60 : f32 to vector<16x1xf32>
    %186 = arith.addf %182, %185 : vector<16x1xf32>
    %187 = math.rsqrt %186 : vector<16x1xf32>
    %188 = vector.broadcast %187 : vector<16x1xf32> to vector<16x32xf32>
    %189 = arith.mulf %184, %188 : vector<16x32xf32>
    %190 = vector.broadcast %170 : vector<1x32xf32> to vector<16x32xf32>
    %191 = arith.mulf %189, %190 : vector<16x32xf32>
    %192 = vector.broadcast %171 : vector<1x32xf32> to vector<16x32xf32>
    %193 = arith.addf %191, %192 : vector<16x32xf32>
    %c1 = arith.constant 1 : index
    %c0_61 = arith.constant 0 : index
    %c0_62 = arith.constant 0 : index
    %194 = vector.load %arg7[%c1, %c0_61, %c0_62] : memref<2x9x32xf32, #tpu.memory_space<vmem>>, vector<1x9x32xf32>
    %195 = vector.shape_cast %194 : vector<1x9x32xf32> to vector<9x32xf32>
    %c1_63 = arith.constant 1 : index
    %c0_64 = arith.constant 0 : index
    %c0_65 = arith.constant 0 : index
    %196 = vector.load %arg3[%c1_63, %c0_64, %c0_65] : memref<2x32x96xf32, #tpu.memory_space<vmem>>, vector<1x32x96xf32>
    %197 = vector.shape_cast %196 : vector<1x32x96xf32> to vector<32x96xf32>
    %c1_66 = arith.constant 1 : index
    %c0_67 = arith.constant 0 : index
    %c0_68 = arith.constant 0 : index
    %198 = vector.load %arg4[%c1_66, %c0_67, %c0_68] : memref<2x32x32xf32, #tpu.memory_space<vmem>>, vector<1x32x32xf32>
    %199 = vector.shape_cast %198 : vector<1x32x32xf32> to vector<32x32xf32>
    %cst_69 = arith.constant dense<0.000000e+00> : vector<16x96xf32>
    %200 = tpu.matmul %193, %197, %cst_69 {dimension_numbers = #tpu.dot_dimension_numbers<[1], [0], [0], [1], [0, 0, 1, 1], [], []>} : vector<16x32xf32>, vector<32x96xf32>, vector<16x96xf32> -> vector<16x96xf32>
    %201 = vector.extract_strided_slice %200 {offsets = [0, 0], sizes = [16, 32], strides = [1, 1]} : vector<16x96xf32> to vector<16x32xf32>
    %202 = vector.extract_strided_slice %195 {offsets = [0, 0], sizes = [1, 32], strides = [1, 1]} : vector<9x32xf32> to vector<1x32xf32>
    %203 = vector.broadcast %202 : vector<1x32xf32> to vector<16x32xf32>
    %204 = arith.addf %201, %203 : vector<16x32xf32>
    %cst_70 = arith.constant 0.353553385 : f32
    %205 = vector.broadcast %cst_70 : f32 to vector<16x32xf32>
    %206 = arith.mulf %204, %205 : vector<16x32xf32>
    %207 = vector.extract_strided_slice %200 {offsets = [0, 32], sizes = [16, 32], strides = [1, 1]} : vector<16x96xf32> to vector<16x32xf32>
    %208 = vector.extract_strided_slice %195 {offsets = [1, 0], sizes = [1, 32], strides = [1, 1]} : vector<9x32xf32> to vector<1x32xf32>
    %209 = vector.broadcast %208 : vector<1x32xf32> to vector<16x32xf32>
    %210 = arith.addf %207, %209 : vector<16x32xf32>
    %211 = vector.extract_strided_slice %200 {offsets = [0, 64], sizes = [16, 32], strides = [1, 1]} : vector<16x96xf32> to vector<16x32xf32>
    %212 = vector.extract_strided_slice %195 {offsets = [2, 0], sizes = [1, 32], strides = [1, 1]} : vector<9x32xf32> to vector<1x32xf32>
    %213 = vector.broadcast %212 : vector<1x32xf32> to vector<16x32xf32>
    %214 = arith.addf %211, %213 : vector<16x32xf32>
    %215 = vector.shape_cast %206 : vector<16x32xf32> to vector<2x8x32xf32>
    %216 = vector.shape_cast %210 : vector<16x32xf32> to vector<2x8x32xf32>
    %217 = vector.shape_cast %214 : vector<16x32xf32> to vector<2x8x32xf32>
    %cst_71 = arith.constant 0.000000e+00 : f32
    %218 = vector.broadcast %cst_71 : f32 to vector<16x32xf32>
    %219 = vector.extract_strided_slice %215 {offsets = [0, 0, 0], sizes = [2, 8, 8], strides = [1, 1, 1]} : vector<2x8x32xf32> to vector<2x8x8xf32>
    %220 = vector.extract_strided_slice %216 {offsets = [0, 0, 0], sizes = [2, 8, 8], strides = [1, 1, 1]} : vector<2x8x32xf32> to vector<2x8x8xf32>
    "tpu.trace_start"() <{level = 10 : i32, message = "bqd,bkd->bqk"}> : () -> ()
    %cst_72 = arith.constant dense<0.000000e+00> : vector<2x8x8xf32>
    %221 = tpu.matmul %219, %220, %cst_72 {dimension_numbers = #tpu.dot_dimension_numbers<[2], [2], [1], [1], [0, 0, 0, 1, 1, 1], [0], [0]>} : vector<2x8x8xf32>, vector<2x8x8xf32>, vector<2x8x8xf32> -> vector<2x8x8xf32>
    "tpu.trace_stop"() : () -> ()
    %222 = vector.broadcast %16 : vector<1x8x8xf32> to vector<2x8x8xf32>
    %223 = arith.addf %221, %222 : vector<2x8x8xf32>
    %cst_73 = arith.constant dense<0xFF800000> : vector<2x8xf32>
    %224 = vector.multi_reduction <maximumf>, %223, %cst_73 [2] : vector<2x8x8xf32> to vector<2x8xf32>
    %225 = vector.shape_cast %224 : vector<2x8xf32> to vector<2x8x1xf32>
    %226 = vector.broadcast %225 : vector<2x8x1xf32> to vector<2x8x8xf32>
    %227 = arith.subf %223, %226 : vector<2x8x8xf32>
    %228 = math.exp %227 : vector<2x8x8xf32>
    %cst_74 = arith.constant dense<0.000000e+00> : vector<2x8xf32>
    %229 = vector.multi_reduction <add>, %228, %cst_74 [2] : vector<2x8x8xf32> to vector<2x8xf32>
    %230 = vector.shape_cast %229 : vector<2x8xf32> to vector<2x8x1xf32>
    %231 = tpu.reciprocal %230 {approx = true} : vector<2x8x1xf32> -> vector<2x8x1xf32>
    %232 = vector.broadcast %231 : vector<2x8x1xf32> to vector<2x8x8xf32>
    %233 = arith.mulf %228, %232 : vector<2x8x8xf32>
    %234 = vector.extract_strided_slice %217 {offsets = [0, 0, 0], sizes = [2, 8, 8], strides = [1, 1, 1]} : vector<2x8x32xf32> to vector<2x8x8xf32>
    "tpu.trace_start"() <{level = 10 : i32, message = "bqk,bkd->bqd"}> : () -> ()
    %cst_75 = arith.constant dense<0.000000e+00> : vector<2x8x8xf32>
    %235 = tpu.matmul %233, %234, %cst_75 {dimension_numbers = #tpu.dot_dimension_numbers<[2], [1], [1], [2], [0, 0, 0, 1, 1, 2], [0], [0]>} : vector<2x8x8xf32>, vector<2x8x8xf32>, vector<2x8x8xf32> -> vector<2x8x8xf32>
    "tpu.trace_stop"() : () -> ()
    %236 = vector.shape_cast %235 : vector<2x8x8xf32> to vector<16x8xf32>
    %237 = vector.extract_strided_slice %199 {offsets = [0, 0], sizes = [8, 32], strides = [1, 1]} : vector<32x32xf32> to vector<8x32xf32>
    %cst_76 = arith.constant dense<0.000000e+00> : vector<16x32xf32>
    %238 = tpu.matmul %236, %237, %cst_76 {dimension_numbers = #tpu.dot_dimension_numbers<[1], [0], [0], [1], [0, 0, 1, 1], [], []>} : vector<16x8xf32>, vector<8x32xf32>, vector<16x32xf32> -> vector<16x32xf32>
    %239 = arith.addf %218, %238 : vector<16x32xf32>
    %240 = vector.extract_strided_slice %215 {offsets = [0, 0, 8], sizes = [2, 8, 8], strides = [1, 1, 1]} : vector<2x8x32xf32> to vector<2x8x8xf32>
    %241 = vector.extract_strided_slice %216 {offsets = [0, 0, 8], sizes = [2, 8, 8], strides = [1, 1, 1]} : vector<2x8x32xf32> to vector<2x8x8xf32>
    "tpu.trace_start"() <{level = 10 : i32, message = "bqd,bkd->bqk"}> : () -> ()
    %cst_77 = arith.constant dense<0.000000e+00> : vector<2x8x8xf32>
    %242 = tpu.matmul %240, %241, %cst_77 {dimension_numbers = #tpu.dot_dimension_numbers<[2], [2], [1], [1], [0, 0, 0, 1, 1, 1], [0], [0]>} : vector<2x8x8xf32>, vector<2x8x8xf32>, vector<2x8x8xf32> -> vector<2x8x8xf32>
    "tpu.trace_stop"() : () -> ()
    %243 = vector.broadcast %16 : vector<1x8x8xf32> to vector<2x8x8xf32>
    %244 = arith.addf %242, %243 : vector<2x8x8xf32>
    %cst_78 = arith.constant dense<0xFF800000> : vector<2x8xf32>
    %245 = vector.multi_reduction <maximumf>, %244, %cst_78 [2] : vector<2x8x8xf32> to vector<2x8xf32>
    %246 = vector.shape_cast %245 : vector<2x8xf32> to vector<2x8x1xf32>
    %247 = vector.broadcast %246 : vector<2x8x1xf32> to vector<2x8x8xf32>
    %248 = arith.subf %244, %247 : vector<2x8x8xf32>
    %249 = math.exp %248 : vector<2x8x8xf32>
    %cst_79 = arith.constant dense<0.000000e+00> : vector<2x8xf32>
    %250 = vector.multi_reduction <add>, %249, %cst_79 [2] : vector<2x8x8xf32> to vector<2x8xf32>
    %251 = vector.shape_cast %250 : vector<2x8xf32> to vector<2x8x1xf32>
    %252 = tpu.reciprocal %251 {approx = true} : vector<2x8x1xf32> -> vector<2x8x1xf32>
    %253 = vector.broadcast %252 : vector<2x8x1xf32> to vector<2x8x8xf32>
    %254 = arith.mulf %249, %253 : vector<2x8x8xf32>
    %255 = vector.extract_strided_slice %217 {offsets = [0, 0, 8], sizes = [2, 8, 8], strides = [1, 1, 1]} : vector<2x8x32xf32> to vector<2x8x8xf32>
    "tpu.trace_start"() <{level = 10 : i32, message = "bqk,bkd->bqd"}> : () -> ()
    %cst_80 = arith.constant dense<0.000000e+00> : vector<2x8x8xf32>
    %256 = tpu.matmul %254, %255, %cst_80 {dimension_numbers = #tpu.dot_dimension_numbers<[2], [1], [1], [2], [0, 0, 0, 1, 1, 2], [0], [0]>} : vector<2x8x8xf32>, vector<2x8x8xf32>, vector<2x8x8xf32> -> vector<2x8x8xf32>
    "tpu.trace_stop"() : () -> ()
    %257 = vector.shape_cast %256 : vector<2x8x8xf32> to vector<16x8xf32>
    %258 = vector.extract_strided_slice %199 {offsets = [8, 0], sizes = [8, 32], strides = [1, 1]} : vector<32x32xf32> to vector<8x32xf32>
    %cst_81 = arith.constant dense<0.000000e+00> : vector<16x32xf32>
    %259 = tpu.matmul %257, %258, %cst_81 {dimension_numbers = #tpu.dot_dimension_numbers<[1], [0], [0], [1], [0, 0, 1, 1], [], []>} : vector<16x8xf32>, vector<8x32xf32>, vector<16x32xf32> -> vector<16x32xf32>
    %260 = arith.addf %239, %259 : vector<16x32xf32>
    %261 = vector.extract_strided_slice %215 {offsets = [0, 0, 16], sizes = [2, 8, 8], strides = [1, 1, 1]} : vector<2x8x32xf32> to vector<2x8x8xf32>
    %262 = vector.extract_strided_slice %216 {offsets = [0, 0, 16], sizes = [2, 8, 8], strides = [1, 1, 1]} : vector<2x8x32xf32> to vector<2x8x8xf32>
    "tpu.trace_start"() <{level = 10 : i32, message = "bqd,bkd->bqk"}> : () -> ()
    %cst_82 = arith.constant dense<0.000000e+00> : vector<2x8x8xf32>
    %263 = tpu.matmul %261, %262, %cst_82 {dimension_numbers = #tpu.dot_dimension_numbers<[2], [2], [1], [1], [0, 0, 0, 1, 1, 1], [0], [0]>} : vector<2x8x8xf32>, vector<2x8x8xf32>, vector<2x8x8xf32> -> vector<2x8x8xf32>
    "tpu.trace_stop"() : () -> ()
    %264 = vector.broadcast %16 : vector<1x8x8xf32> to vector<2x8x8xf32>
    %265 = arith.addf %263, %264 : vector<2x8x8xf32>
    %cst_83 = arith.constant dense<0xFF800000> : vector<2x8xf32>
    %266 = vector.multi_reduction <maximumf>, %265, %cst_83 [2] : vector<2x8x8xf32> to vector<2x8xf32>
    %267 = vector.shape_cast %266 : vector<2x8xf32> to vector<2x8x1xf32>
    %268 = vector.broadcast %267 : vector<2x8x1xf32> to vector<2x8x8xf32>
    %269 = arith.subf %265, %268 : vector<2x8x8xf32>
    %270 = math.exp %269 : vector<2x8x8xf32>
    %cst_84 = arith.constant dense<0.000000e+00> : vector<2x8xf32>
    %271 = vector.multi_reduction <add>, %270, %cst_84 [2] : vector<2x8x8xf32> to vector<2x8xf32>
    %272 = vector.shape_cast %271 : vector<2x8xf32> to vector<2x8x1xf32>
    %273 = tpu.reciprocal %272 {approx = true} : vector<2x8x1xf32> -> vector<2x8x1xf32>
    %274 = vector.broadcast %273 : vector<2x8x1xf32> to vector<2x8x8xf32>
    %275 = arith.mulf %270, %274 : vector<2x8x8xf32>
    %276 = vector.extract_strided_slice %217 {offsets = [0, 0, 16], sizes = [2, 8, 8], strides = [1, 1, 1]} : vector<2x8x32xf32> to vector<2x8x8xf32>
    "tpu.trace_start"() <{level = 10 : i32, message = "bqk,bkd->bqd"}> : () -> ()
    %cst_85 = arith.constant dense<0.000000e+00> : vector<2x8x8xf32>
    %277 = tpu.matmul %275, %276, %cst_85 {dimension_numbers = #tpu.dot_dimension_numbers<[2], [1], [1], [2], [0, 0, 0, 1, 1, 2], [0], [0]>} : vector<2x8x8xf32>, vector<2x8x8xf32>, vector<2x8x8xf32> -> vector<2x8x8xf32>
    "tpu.trace_stop"() : () -> ()
    %278 = vector.shape_cast %277 : vector<2x8x8xf32> to vector<16x8xf32>
    %279 = vector.extract_strided_slice %199 {offsets = [16, 0], sizes = [8, 32], strides = [1, 1]} : vector<32x32xf32> to vector<8x32xf32>
    %cst_86 = arith.constant dense<0.000000e+00> : vector<16x32xf32>
    %280 = tpu.matmul %278, %279, %cst_86 {dimension_numbers = #tpu.dot_dimension_numbers<[1], [0], [0], [1], [0, 0, 1, 1], [], []>} : vector<16x8xf32>, vector<8x32xf32>, vector<16x32xf32> -> vector<16x32xf32>
    %281 = arith.addf %260, %280 : vector<16x32xf32>
    %282 = vector.extract_strided_slice %215 {offsets = [0, 0, 24], sizes = [2, 8, 8], strides = [1, 1, 1]} : vector<2x8x32xf32> to vector<2x8x8xf32>
    %283 = vector.extract_strided_slice %216 {offsets = [0, 0, 24], sizes = [2, 8, 8], strides = [1, 1, 1]} : vector<2x8x32xf32> to vector<2x8x8xf32>
    "tpu.trace_start"() <{level = 10 : i32, message = "bqd,bkd->bqk"}> : () -> ()
    %cst_87 = arith.constant dense<0.000000e+00> : vector<2x8x8xf32>
    %284 = tpu.matmul %282, %283, %cst_87 {dimension_numbers = #tpu.dot_dimension_numbers<[2], [2], [1], [1], [0, 0, 0, 1, 1, 1], [0], [0]>} : vector<2x8x8xf32>, vector<2x8x8xf32>, vector<2x8x8xf32> -> vector<2x8x8xf32>
    "tpu.trace_stop"() : () -> ()
    %285 = vector.broadcast %16 : vector<1x8x8xf32> to vector<2x8x8xf32>
    %286 = arith.addf %284, %285 : vector<2x8x8xf32>
    %cst_88 = arith.constant dense<0xFF800000> : vector<2x8xf32>
    %287 = vector.multi_reduction <maximumf>, %286, %cst_88 [2] : vector<2x8x8xf32> to vector<2x8xf32>
    %288 = vector.shape_cast %287 : vector<2x8xf32> to vector<2x8x1xf32>
    %289 = vector.broadcast %288 : vector<2x8x1xf32> to vector<2x8x8xf32>
    %290 = arith.subf %286, %289 : vector<2x8x8xf32>
    %291 = math.exp %290 : vector<2x8x8xf32>
    %cst_89 = arith.constant dense<0.000000e+00> : vector<2x8xf32>
    %292 = vector.multi_reduction <add>, %291, %cst_89 [2] : vector<2x8x8xf32> to vector<2x8xf32>
    %293 = vector.shape_cast %292 : vector<2x8xf32> to vector<2x8x1xf32>
    %294 = tpu.reciprocal %293 {approx = true} : vector<2x8x1xf32> -> vector<2x8x1xf32>
    %295 = vector.broadcast %294 : vector<2x8x1xf32> to vector<2x8x8xf32>
    %296 = arith.mulf %291, %295 : vector<2x8x8xf32>
    %297 = vector.extract_strided_slice %217 {offsets = [0, 0, 24], sizes = [2, 8, 8], strides = [1, 1, 1]} : vector<2x8x32xf32> to vector<2x8x8xf32>
    "tpu.trace_start"() <{level = 10 : i32, message = "bqk,bkd->bqd"}> : () -> ()
    %cst_90 = arith.constant dense<0.000000e+00> : vector<2x8x8xf32>
    %298 = tpu.matmul %296, %297, %cst_90 {dimension_numbers = #tpu.dot_dimension_numbers<[2], [1], [1], [2], [0, 0, 0, 1, 1, 2], [0], [0]>} : vector<2x8x8xf32>, vector<2x8x8xf32>, vector<2x8x8xf32> -> vector<2x8x8xf32>
    "tpu.trace_stop"() : () -> ()
    %299 = vector.shape_cast %298 : vector<2x8x8xf32> to vector<16x8xf32>
    %300 = vector.extract_strided_slice %199 {offsets = [24, 0], sizes = [8, 32], strides = [1, 1]} : vector<32x32xf32> to vector<8x32xf32>
    %cst_91 = arith.constant dense<0.000000e+00> : vector<16x32xf32>
    %301 = tpu.matmul %299, %300, %cst_91 {dimension_numbers = #tpu.dot_dimension_numbers<[1], [0], [0], [1], [0, 0, 1, 1], [], []>} : vector<16x8xf32>, vector<8x32xf32>, vector<16x32xf32> -> vector<16x32xf32>
    %302 = arith.addf %281, %301 : vector<16x32xf32>
    %303 = vector.extract_strided_slice %195 {offsets = [3, 0], sizes = [1, 32], strides = [1, 1]} : vector<9x32xf32> to vector<1x32xf32>
    %304 = vector.broadcast %303 : vector<1x32xf32> to vector<16x32xf32>
    %305 = arith.addf %302, %304 : vector<16x32xf32>
    %306 = arith.addf %193, %305 : vector<16x32xf32>
    %307 = vector.extract_strided_slice %195 {offsets = [4, 0], sizes = [1, 32], strides = [1, 1]} : vector<9x32xf32> to vector<1x32xf32>
    %308 = vector.extract_strided_slice %195 {offsets = [5, 0], sizes = [1, 32], strides = [1, 1]} : vector<9x32xf32> to vector<1x32xf32>
    %cst_92 = arith.constant dense<0.000000e+00> : vector<16xf32>
    %309 = vector.multi_reduction <add>, %306, %cst_92 [1] : vector<16x32xf32> to vector<16xf32>
    %310 = vector.shape_cast %309 : vector<16xf32> to vector<16x1xf32>
    %cst_93 = arith.constant 3.200000e+01 : f32
    %311 = vector.broadcast %cst_93 : f32 to vector<16x1xf32>
    %312 = arith.divf %310, %311 : vector<16x1xf32>
    %313 = vector.broadcast %312 : vector<16x1xf32> to vector<16x32xf32>
    %314 = arith.subf %306, %313 : vector<16x32xf32>
    %315 = arith.mulf %314, %314 : vector<16x32xf32>
    %cst_94 = arith.constant dense<0.000000e+00> : vector<16xf32>
    %316 = vector.multi_reduction <add>, %315, %cst_94 [1] : vector<16x32xf32> to vector<16xf32>
    %317 = vector.shape_cast %316 : vector<16xf32> to vector<16x1xf32>
    %cst_95 = arith.constant 3.200000e+01 : f32
    %318 = vector.broadcast %cst_95 : f32 to vector<16x1xf32>
    %319 = arith.divf %317, %318 : vector<16x1xf32>
    %320 = vector.broadcast %312 : vector<16x1xf32> to vector<16x32xf32>
    %321 = arith.subf %306, %320 : vector<16x32xf32>
    %cst_96 = arith.constant 9.99999974E-6 : f32
    %322 = vector.broadcast %cst_96 : f32 to vector<16x1xf32>
    %323 = arith.addf %319, %322 : vector<16x1xf32>
    %324 = math.rsqrt %323 : vector<16x1xf32>
    %325 = vector.broadcast %324 : vector<16x1xf32> to vector<16x32xf32>
    %326 = arith.mulf %321, %325 : vector<16x32xf32>
    %327 = vector.broadcast %307 : vector<1x32xf32> to vector<16x32xf32>
    %328 = arith.mulf %326, %327 : vector<16x32xf32>
    %329 = vector.broadcast %308 : vector<1x32xf32> to vector<16x32xf32>
    %330 = arith.addf %328, %329 : vector<16x32xf32>
    %c1_97 = arith.constant 1 : index
    %c0_98 = arith.constant 0 : index
    %c0_99 = arith.constant 0 : index
    %331 = vector.load %arg5[%c1_97, %c0_98, %c0_99] : memref<2x32x64xf32, #tpu.memory_space<vmem>>, vector<1x32x64xf32>
    %332 = vector.shape_cast %331 : vector<1x32x64xf32> to vector<32x64xf32>
    %cst_100 = arith.constant dense<0.000000e+00> : vector<16x64xf32>
    %333 = tpu.matmul %330, %332, %cst_100 {dimension_numbers = #tpu.dot_dimension_numbers<[1], [0], [0], [1], [0, 0, 1, 1], [], []>} : vector<16x32xf32>, vector<32x64xf32>, vector<16x64xf32> -> vector<16x64xf32>
    %c1_101 = arith.constant 1 : index
    %c0_102 = arith.constant 0 : index
    %c0_103 = arith.constant 0 : index
    %334 = vector.load %arg8[%c1_101, %c0_102, %c0_103] : memref<2x1x64xf32, #tpu.memory_space<vmem>>, vector<1x1x64xf32>
    %335 = vector.shape_cast %334 : vector<1x1x64xf32> to vector<1x64xf32>
    %336 = vector.broadcast %335 : vector<1x64xf32> to vector<16x64xf32>
    %337 = arith.addf %333, %336 : vector<16x64xf32>
    %cst_104 = arith.constant 0.000000e+00 : f32
    %338 = vector.broadcast %cst_104 : f32 to vector<16x64xf32>
    %339 = arith.maximumf %337, %338 : vector<16x64xf32>
    %c1_105 = arith.constant 1 : index
    %c0_106 = arith.constant 0 : index
    %c0_107 = arith.constant 0 : index
    %340 = vector.load %arg6[%c1_105, %c0_106, %c0_107] : memref<2x64x32xf32, #tpu.memory_space<vmem>>, vector<1x64x32xf32>
    %341 = vector.shape_cast %340 : vector<1x64x32xf32> to vector<64x32xf32>
    %cst_108 = arith.constant dense<0.000000e+00> : vector<16x32xf32>
    %342 = tpu.matmul %339, %341, %cst_108 {dimension_numbers = #tpu.dot_dimension_numbers<[1], [0], [0], [1], [0, 0, 1, 1], [], []>} : vector<16x64xf32>, vector<64x32xf32>, vector<16x32xf32> -> vector<16x32xf32>
    %343 = vector.extract_strided_slice %195 {offsets = [6, 0], sizes = [1, 32], strides = [1, 1]} : vector<9x32xf32> to vector<1x32xf32>
    %344 = vector.broadcast %343 : vector<1x32xf32> to vector<16x32xf32>
    %345 = arith.addf %342, %344 : vector<16x32xf32>
    %346 = arith.addf %330, %345 : vector<16x32xf32>
    %347 = vector.extract_strided_slice %195 {offsets = [7, 0], sizes = [1, 32], strides = [1, 1]} : vector<9x32xf32> to vector<1x32xf32>
    %348 = vector.extract_strided_slice %195 {offsets = [8, 0], sizes = [1, 32], strides = [1, 1]} : vector<9x32xf32> to vector<1x32xf32>
    %cst_109 = arith.constant dense<0.000000e+00> : vector<16xf32>
    %349 = vector.multi_reduction <add>, %346, %cst_109 [1] : vector<16x32xf32> to vector<16xf32>
    %350 = vector.shape_cast %349 : vector<16xf32> to vector<16x1xf32>
    %cst_110 = arith.constant 3.200000e+01 : f32
    %351 = vector.broadcast %cst_110 : f32 to vector<16x1xf32>
    %352 = arith.divf %350, %351 : vector<16x1xf32>
    %353 = vector.broadcast %352 : vector<16x1xf32> to vector<16x32xf32>
    %354 = arith.subf %346, %353 : vector<16x32xf32>
    %355 = arith.mulf %354, %354 : vector<16x32xf32>
    %cst_111 = arith.constant dense<0.000000e+00> : vector<16xf32>
    %356 = vector.multi_reduction <add>, %355, %cst_111 [1] : vector<16x32xf32> to vector<16xf32>
    %357 = vector.shape_cast %356 : vector<16xf32> to vector<16x1xf32>
    %cst_112 = arith.constant 3.200000e+01 : f32
    %358 = vector.broadcast %cst_112 : f32 to vector<16x1xf32>
    %359 = arith.divf %357, %358 : vector<16x1xf32>
    %360 = vector.broadcast %352 : vector<16x1xf32> to vector<16x32xf32>
    %361 = arith.subf %346, %360 : vector<16x32xf32>
    %cst_113 = arith.constant 9.99999974E-6 : f32
    %362 = vector.broadcast %cst_113 : f32 to vector<16x1xf32>
    %363 = arith.addf %359, %362 : vector<16x1xf32>
    %364 = math.rsqrt %363 : vector<16x1xf32>
    %365 = vector.broadcast %364 : vector<16x1xf32> to vector<16x32xf32>
    %366 = arith.mulf %361, %365 : vector<16x32xf32>
    %367 = vector.broadcast %347 : vector<1x32xf32> to vector<16x32xf32>
    %368 = arith.mulf %366, %367 : vector<16x32xf32>
    %369 = vector.broadcast %348 : vector<1x32xf32> to vector<16x32xf32>
    %370 = arith.addf %368, %369 : vector<16x32xf32>
    %c0_114 = arith.constant 0 : index
    %c0_115 = arith.constant 0 : index
    %371 = vector.load %arg9[%c0_114, %c0_115] : memref<2x32xf32, #tpu.memory_space<vmem>>, vector<2x32xf32>
    %372 = vector.extract_strided_slice %371 {offsets = [0, 0], sizes = [1, 32], strides = [1, 1]} : vector<2x32xf32> to vector<1x32xf32>
    %373 = vector.extract_strided_slice %371 {offsets = [1, 0], sizes = [1, 32], strides = [1, 1]} : vector<2x32xf32> to vector<1x32xf32>
    %cst_116 = arith.constant dense<0.000000e+00> : vector<16xf32>
    %374 = vector.multi_reduction <add>, %370, %cst_116 [1] : vector<16x32xf32> to vector<16xf32>
    %375 = vector.shape_cast %374 : vector<16xf32> to vector<16x1xf32>
    %cst_117 = arith.constant 3.200000e+01 : f32
    %376 = vector.broadcast %cst_117 : f32 to vector<16x1xf32>
    %377 = arith.divf %375, %376 : vector<16x1xf32>
    %378 = vector.broadcast %377 : vector<16x1xf32> to vector<16x32xf32>
    %379 = arith.subf %370, %378 : vector<16x32xf32>
    %380 = arith.mulf %379, %379 : vector<16x32xf32>
    %cst_118 = arith.constant dense<0.000000e+00> : vector<16xf32>
    %381 = vector.multi_reduction <add>, %380, %cst_118 [1] : vector<16x32xf32> to vector<16xf32>
    %382 = vector.shape_cast %381 : vector<16xf32> to vector<16x1xf32>
    %cst_119 = arith.constant 3.200000e+01 : f32
    %383 = vector.broadcast %cst_119 : f32 to vector<16x1xf32>
    %384 = arith.divf %382, %383 : vector<16x1xf32>
    %385 = vector.broadcast %377 : vector<16x1xf32> to vector<16x32xf32>
    %386 = arith.subf %370, %385 : vector<16x32xf32>
    %cst_120 = arith.constant 9.99999974E-6 : f32
    %387 = vector.broadcast %cst_120 : f32 to vector<16x1xf32>
    %388 = arith.addf %384, %387 : vector<16x1xf32>
    %389 = math.rsqrt %388 : vector<16x1xf32>
    %390 = vector.broadcast %389 : vector<16x1xf32> to vector<16x32xf32>
    %391 = arith.mulf %386, %390 : vector<16x32xf32>
    %392 = vector.broadcast %372 : vector<1x32xf32> to vector<16x32xf32>
    %393 = arith.mulf %391, %392 : vector<16x32xf32>
    %394 = vector.broadcast %373 : vector<1x32xf32> to vector<16x32xf32>
    %395 = arith.addf %393, %394 : vector<16x32xf32>
    %c0_121 = arith.constant 0 : index
    %c0_122 = arith.constant 0 : index
    %396 = vector.load %arg10[%c0_121, %c0_122] : memref<32x16xf32, #tpu.memory_space<vmem>>, vector<32x16xf32>
    %cst_123 = arith.constant dense<0.000000e+00> : vector<16x16xf32>
    %397 = tpu.matmul %395, %396, %cst_123 {dimension_numbers = #tpu.dot_dimension_numbers<[1], [0], [0], [1], [0, 0, 1, 1], [], []>} : vector<16x32xf32>, vector<32x16xf32>, vector<16x16xf32> -> vector<16x16xf32>
    %c0_124 = arith.constant 0 : index
    %c0_125 = arith.constant 0 : index
    %398 = vector.load %arg11[%c0_124, %c0_125] : memref<16x16xf32, #tpu.memory_space<vmem>>, vector<16x16xf32>
    tpu.vector_store %arg11[%c0_124, %c0_125], %397 {strides = array<i32>} : memref<16x16xf32, #tpu.memory_space<vmem>>, vector<16x16xf32>,
    return
  }
}

</mosaic_0001>

<bundles_post_ra>
// kernel: counting_transformer_forward.1
= control target key start
LH: loop header
LB: loop body
LE: loop exit
PB: predicated region body
PF: predicated region fallthrough
CT: control target
= control target key end

     0   :  { %v2222_v2 = vmov 0   ;;  %s2812_s0 = inlined_call_operand.vmem [shape: s32[16,1], index: 0, kind: input, shape index: {}]   ;;  %s2813_s1 = inlined_call_operand.vmem [shape: f32[16,32], index: 1, kind: input, shape index: {}]   ;;  %s2814_s2 = inlined_call_operand.vmem [shape: f32[16,32], index: 2, kind: input, shape index: {}]   ;;  %s2815_s3 = inlined_call_operand.vmem [shape: f32[2,32,96], index: 3, kind: input, shape index: {}]   ;;  %s2816_s4 = inlined_call_operand.vmem [shape: f32[2,32,32], index: 4, kind: input, shape index: {}]   ;;  %s2817_s5 = inlined_call_operand.vmem [shape: f32[2,32,64], index: 5, kind: input, shape index: {}]   ;;  %s2818_s6 = inlined_call_operand.vmem [shape: f32[2,64,32], index: 6, kind: input, shape index: {}]   ;;  %s2819_s7 = inlined_call_operand.vmem [shape: f32[2,9,32], index: 7, kind: input, shape index: {}]   ;;  %s2820_s8 = inlined_call_operand.vmem [shape: f32[2,1,64], index: 8, kind: input, shape index: {}]   ;;  %s2821_s9 = inlined_call_operand.vmem [shape: f32[2,32], index: 9, kind: input, shape index: {}]   ;;  %s2822_s10 = inlined_call_operand.vmem [shape: f32[32,16], index: 10, kind: input, shape index: {}]   ;;  %s2823_s11 = inlined_call_operand.hbm [shape: f32[16,16], index: 11, kind: output, shape index: {}]  }
   0x1   :  { %v39_v0 = vld [vmem:[%s2812_s0] sm:$0xff]  ;;  %v56_v1 = vld [vmem:[%s2814_s2 + $0x8] sm:$0xff]  ;;  %2105 = vset.pattern.permute.xlu0 %v2222_v2 }
   0x2   :  { %80 = vmatpush.msra.mxu0 %v56_v1  ;;  %44 = vperm.xlu0 %2105, %v39_v0  }
   0x3   :  { %16 = vsyncpa [#allocation3], 0  ;;  %v40_v3 = vld [vmem:[%s2812_s0 + $0x8] sm:$0xff]  ;;  %v55_v4 = vld [vmem:[%s2814_s2] sm:$0xff]  ;;  %v41_v7 = vlaneseq  ;;  %vm59_vm0 = vcmask 130048   ;;  %v2223_v10 = vmov 0.0  }
   0x4   :  { %81 = vmatpush.msra.mxu0 %v55_v4  ;;  %v98_v5 = vld [vmem:[%s2815_s3 + $0x18] sm:$0xff]  ;;  %v97_v6 = vld [vmem:[%s2815_s3 + $0x10] sm:$0xff]  ;;  %v96_v14 = vld [vmem:[%s2815_s3 + $0x8] sm:$0xff]  ;;  %s2224_s14 = smov 32   ;;  %vm103_vm3 = vcmask 261120   ;;  %s2225_s19 = smov 96  }
   0x5   :  { %122 = vmatpush.msra.mxu1 %v98_v5  ;;  %v2320_v8 = vand.u32 127, %v41_v7  ;;  %v95_v15 = vld [vmem:[%s2815_s3] sm:$0xff]  ;;  %v58_v21 = vld [vmem:[%s2813_s1 + $0x8] sm:$0xff]  ;;  %s2226_s20 = smov 120   ;;  %s2228_s21 = smov 64   ;;  %vm155_vm4 = vcmask 64512  }
   0x6   :  { %v2335_v16 = vld [vmem:[%s2819_s7] sm:$0xff]  ;;  %v90_v43 = vshrl.u32 %v41_v7, 7  ;;  %v2229_v44 = vmov -10000.0   ;;  %s2230_s22 = smov 80   ;;  %s2231_s23 = smov 56   ;;  %vm905_vm10 = vcmask 523264  }
   0x7   :  { %123 = vmatpush.msra.mxu1 %v97_v6  ;;  %v138_v17 = vperm.slane %v2335_v16, 1  ;;  %v57_v18 = vld [vmem:[%s2813_s1] sm:$0xff]  ;;  %v133_v24 = vperm.slane %v2335_v16, 0  ;;  %s2227_s1 = smov 88   ;;  %v145_v32 = vperm.slane %v2335_v16, 2  ;;  %s2232_s24 = smov 72  }
   0x8   :  { %vm91_vm5 = vcmp.ge.s32.totalorder %v90_v43, %v2320_v8  ;;  %s2233_s25 = smov 112   ;;  %s2234_s28 = smov 104  }
   0x9   :  { %124 = vmatpush.msra.mxu1 %v96_v14  ;;  %140 = vrot.lane.b32.xlu1 %v138_v17, %s2224_s14  ;;  %v2387_v45 = vsel %vm91_vm5, 0.0, %v2229_v44  ;;  %v99_v14 = vld [vmem:[%s2816_s4] sm:$0xff]  ;;  %s2235_s29 = smov 48   ;;  %s2236_s30 = smov 40  }
   0xa   :  { %47 = vperm.xlu0 %2105, %v40_v3   ;;  %s1969_s27 = sshll.u32 %s2823_s11, 4  ;;  %s2239_s0 = smov 128   ;;  %s1970_s27 = int_to_ptr.hbm [resolvable:$true] %s1969_s27 }
   0xb   :  { %125 = vmatpush.msra.mxu1 %v95_v15  ;;  %s2240_s2 = smov 8  }
  0x74   :  { %v45_v9 = vpop.permute.xlu0 %44 }
  0x75   :  { %vm49_vm1 = vcmp.eq.s32.totalorder %v45_v9, %v2320_v8 }
  0x76   :  { %v1981_v11 = vsel %vm49_vm1, 1.0, %v2223_v10 }
  0x77   :  { %1983 = vmatmul.msk.f32.vlgmr.msra.gmra.mxu0 %vm59_vm0, %v1981_v11 }
  0x7b   :  { %v141_v25 = vpop.permute.xlu1 %140 }
  0x7c   :  { %v48_v12 = vpop.permute.xlu0 %47 }
  0x7d   :  { %vm50_vm2 = vcmp.eq.s32.totalorder %v48_v12, %v2320_v8 }
  0x7e   :  { %v1982_v13 = vsel %vm50_vm2, 1.0, %v2223_v10 }
  0x7f   :  { %1984 = vmatmul.msk.f32.gmra.mxu0 %vm59_vm0, %v1982_v13 }
  0xf4   :  { %v83_v19 = vpop.f32.mrf.mxu0 }
  0xf5   :  { %v2342_v20 = vadd.f32 %v83_v19, %v57_v18 }
  0xf7   :  { %1985 = vmatmul.msk.f32.vlgmr.msra.gmra.mxu1 %vm103_vm3, %v2342_v20 }
  0xfc   :  { %v86_v22 = vpop.f32.mrf.mxu0 }
  0xfd   :  { %v2349_v23 = vadd.f32 %v86_v22, %v58_v21 }
  0xff   :  { %1986 = vmatmul.msk.f32.gmra.mxu1 %vm103_vm3, %v2349_v23 }
 0x174   :  { %v127_v26 = vpop.f32.mrf.mxu1 }
 0x175   :  { %v134_v27 = vadd.f32 %v133_v24, %v127_v26  ;;  %v143_v28 = vadd.f32 %v141_v25, %v127_v26 }
 0x177   :  { %v2354_v29 = vmul.f32 0.35355338, %v134_v27  ;;  %153 = vrot.lane.b32.xlu1 %v143_v28, %s2225_s19 }
 0x179   :  { %285 = vrot.lane.b32.xlu0 %v2354_v29, %s2226_s20 }
 0x17c   :  { %v130_v30 = vpop.f32.mrf.mxu1 }
 0x17d   :  { %v2359_v31 = vadd.f32 %v141_v25, %v130_v30  ;;  %v135_v33 = vadd.f32 %v133_v24, %v130_v30 }
 0x17f   :  { %182 = vrot.lane.b32.xlu2 %v2359_v31, %s2225_s19  ;;  %v2367_v35 = vmul.f32 0.35355338, %v135_v33 }
 0x187   :  { %287 = vrot.lane.b32.xlu2 %v143_v28, %s2227_s1 }
 0x18f   :  { %147 = vrot.lane.b32.xlu2 %v145_v32, %s2228_s21 }
 0x1d9   :  { %v183_v34 = vpop.permute.xlu2 %182 }
 0x1da   :  { %1989 = vmatpush.xpose.msk.msra.mxu3 %vm155_vm4, %v183_v34  ;;  %v100_v34 = vld [vmem:[%s2816_s4 + $0x8] sm:$0xff] }
 0x1dd   :  { %1990 = vmatmul.msk.f32.vlgmr.msra.gmra.mxu3 %vm155_vm4, %v2367_v35 }
 0x1e1   :  { %v288_v36 = vpop.permute.xlu2 %287 }
 0x1e2   :  { %1993 = vmatpush.xpose.msk.msrb.mxu0 %vm155_vm4, %v288_v36 }
 0x1e6   :  { %436 = vmatpush.msra.mxu0 %v100_v34 }
 0x1e9   :  { %v154_v37 = vpop.permute.xlu1 %153  ;;  %v148_v38 = vpop.permute.xlu2 %147 }
 0x1ea   :  { %v2372_v39 = vadd.f32 %v148_v38, %v127_v26  ;;  %1987 = vmatpush.xpose.msk.msra.mxu2 %vm155_vm4, %v154_v37  ;;  %v2396_v55 = vadd.f32 %v148_v38, %v130_v30 }
 0x1eb   :  { %v286_v40 = vpop.permute.xlu0 %285 }
 0x1ec   :  { %232 = vrot.lane.b32.xlu2 %v2372_v39, %s2228_s21  ;;  %1994 = vmatmul.msk.f32.vlgmr.msrb.gmra.mxu0 %vm155_vm4, %v286_v40 }
 0x1ed   :  { %1988 = vmatmul.msk.f32.vlgmr.msra.gmra.mxu2 %vm155_vm4, %v2354_v29 }
 0x1f4   :  { %315 = vrot.lane.b32.xlu2 %v2359_v31, %s2227_s1 }
 0x1fc   :  { %313 = vrot.lane.b32.xlu2 %v2367_v35, %s2226_s20 }
 0x246   :  { %v233_v41 = vpop.permute.xlu2 %232 }
 0x247   :  { %253 = vmatpush.msrb.mxu2 %v233_v41 }
 0x24e   :  { %v316_v42 = vpop.permute.xlu2 %315 }
 0x24f   :  { %1995 = vmatpush.xpose.msk.msra.mxu2 %vm155_vm4, %v316_v42 }
 0x256   :  { %v314_v56 = vpop.permute.xlu2 %313 }
 0x260   :  { %v206_v46 = vpop.f32.mrf.mxu3 }
 0x261   :  { %v207_v47 = vadd.f32 %v206_v46, %v2387_v45 }
 0x263   :  { %v212_v48 = vsel %vm155_vm4, %v207_v47, -inf }
 0x264   :  { %213 = vmax.xlane.f32.xlu2 %v212_v48 }
 0x269   :  { %v310_v52 = vpop.f32.mrf.mxu0 }
 0x26a   :  { %v311_v53 = vadd.f32 %v310_v52, %v2387_v45 }
 0x26c   :  { %v341_v54 = vsel %vm155_vm4, %v311_v53, -inf }
 0x270   :  { %v178_v49 = vpop.f32.mrf.mxu2 }
 0x271   :  { %v179_v50 = vadd.f32 %v178_v49, %v2387_v45 }
 0x273   :  { %v209_v51 = vsel %vm155_vm4, %v179_v50, -inf }
 0x274   :  { %210 = vmax.xlane.f32.xlu1 %v209_v51 }
 0x27c   :  { %475 = vrot.lane.b32.xlu2 %v143_v28, %s2230_s22  ;;  %342 = vmax.xlane.f32.xlu1 %v341_v54 }
 0x284   :  { %389 = vrot.lane.b32.xlu2 %v2396_v55, %s2231_s23 }
 0x28c   :  { %503 = vrot.lane.b32.xlu2 %v2359_v31, %s2230_s22 }
 0x294   :  { %636 = vrot.lane.b32.xlu2 %v143_v28, %s2232_s24 }
 0x29c   :  { %501 = vrot.lane.b32.xlu2 %v2367_v35, %s2233_s25 }
 0x2d7   :  { %v214_v57 = vpop.xlane.xlu2 %213 }
 0x2d8   :  { %v216_v7 = vsub.f32 %v207_v47, %v214_v57 }
 0x2da   :  { %v219_v8 = vmul.f32 1.442695, %v216_v7 }
 0x2df   :  { %v476_v58 = vpop.permute.xlu2 %475 }
 0x2e7   :  { %v211_v59 = vpop.xlane.xlu1 %210  ;;  %v390_v60 = vpop.permute.xlu2 %389 }
 0x2e8   :  { %v215_v61 = vsub.f32 %v179_v50, %v211_v59  ;;  %410 = vmatpush.msrb.mxu1 %v390_v60 }
 0x2ea   :  { %v217_v62 = vmul.f32 1.442695, %v215_v61 }
 0x2ec   :  { %2110 = vpow2.f32 %v217_v62 }
 0x2ef   :  { %v504_v63 = vpop.permute.xlu2 %503  ;;  %v343_v0 = vpop.xlane.xlu1 %342 }
 0x2f0   :  { %v347_v1 = vsub.f32 %v311_v53, %v343_v0  ;;  %2005 = vmatpush.xpose.msk.msra.mxu1 %vm155_vm4, %v504_v63 }
 0x2f2   :  { %v2111_v2 = vpop.eup %2110  ;;  %v349_v3 = vmul.f32 1.442695, %v347_v1 }
 0x2f3   :  { %v221_v4 = vsel %vm155_vm4, %v2111_v2, 0.0 }
 0x2f4   :  { %2112 = vpow2.f32 %v349_v3  ;;  %222 = vadd.xlane.f32.xlu0 %v221_v4 }
 0x2f5   :  { %2114 = vpow2.f32 %v219_v8 }
 0x2f7   :  { %v637_v15 = vpop.permute.xlu2 %636 }
 0x2fa   :  { %v2113_v5 = vpop.eup %2112 }
 0x2fb   :  { %v353_v6 = vsel %vm155_vm4, %v2113_v5, 0.0  ;;  %v2115_v9 = vpop.eup %2114 }
 0x2fc   :  { %354 = vadd.xlane.f32.xlu1 %v353_v6  ;;  %v224_v10 = vsel %vm155_vm4, %v2115_v9, 0.0 }
 0x2ff   :  { %v502_v54 = vpop.permute.xlu2 %501 }
 0x308   :  { %259 = vrot.lane.b32.xlu0 %v2396_v55, %s2228_s21 }
 0x315   :  { %363 = vrot.lane.b32.xlu1 %v2372_v39, %s2231_s23 }
 0x332   :  { %225 = vadd.xlane.f32.xlu0 %v224_v10 }
 0x346   :  { %473 = vrot.lane.b32.xlu0 %v2354_v29, %s2233_s25 }
 0x367   :  { %v223_v11 = vpop.xlane.xlu0 %222 }
 0x368   :  { %2116 = vrcp.f32 %v223_v11 }
 0x36e   :  { %v2117_v12 = vpop.eup %2116 }
 0x36f   :  { %v229_v13 = vmul.f32 %v2117_v12, %v2111_v2  ;;  %v355_v18 = vpop.xlane.xlu1 %354  ;;  %v101_v12 = vld [vmem:[%s2816_s4 + $0x10] sm:$0xff] }
 0x370   :  { %624 = vmatpush.msrb.mxu0 %v101_v12 }
 0x371   :  { %1991 = vmatmul.msk.f32.vlgmr.msrb.gmra.mxu2 %vm155_vm4, %v229_v13 }
 0x372   :  { %465 = vmatpush.msrb.mxu2 %v99_v14 }
 0x379   :  { %1996 = vmatmul.msk.f32.vlgmr.msra.gmra.mxu2 %vm155_vm4, %v314_v56 }
 0x37a   :  { %2011 = vmatpush.xpose.msk.msra.mxu2 %vm155_vm4, %v637_v15  ;;  %v260_v17 = vpop.permute.xlu0 %259 }
 0x37b   :  { %280 = vmatpush.msrb.mxu3 %v260_v17 }
 0x387   :  { %v364_v19 = vpop.permute.xlu1 %363 }
 0x388   :  { %384 = vmatpush.msra.mxu3 %v364_v19 }
 0x3a5   :  { %v226_v21 = vpop.xlane.xlu0 %225 }
 0x3a6   :  { %2118 = vrcp.f32 %v226_v21 }
 0x3a7   :  { %2120 = vrcp.f32 %v355_v18 }
 0x3ac   :  { %v2119_v22 = vpop.eup %2118 }
 0x3ad   :  { %v230_v24 = vmul.f32 %v2119_v22, %v2115_v9  ;;  %v2121_v25 = vpop.eup %2120 }
 0x3ae   :  { %v361_v26 = vmul.f32 %v2121_v25, %v2113_v5 }
 0x3af   :  { %1992 = vmatmul.msk.f32.vlgmr.msrb.gmra.mxu3 %vm155_vm4, %v230_v24 }
 0x3b0   :  { %2003 = vmatpush.xpose.msk.msrb.mxu3 %vm155_vm4, %v476_v58 }
 0x3b7   :  { %1997 = vmatmul.msk.f32.vlgmr.msra.gmra.mxu3 %vm155_vm4, %v361_v26 }
 0x3b8   :  { %v474_v27 = vpop.permute.xlu0 %473 }
 0x3bf   :  { %2004 = vmatmul.msk.f32.vlgmr.msrb.gmra.mxu3 %vm155_vm4, %v474_v27 }
 0x3f4   :  { %v255_v28 = vpop.f32.mrf.mxu2 }
 0x3f5   :  { %2001 = vmatmul.msk.f32.vlgmr.msrb.gmra.mxu2 %vm155_vm4, %v255_v28 }
 0x3fc   :  { %v338_v30 = vpop.f32.mrf.mxu2 }
 0x3fd   :  { %v339_v32 = vadd.f32 %v338_v30, %v2387_v45 }
 0x3ff   :  { %v344_v33 = vsel %vm155_vm4, %v339_v32, -inf }
 0x400   :  { %345 = vmax.xlane.f32.xlu1 %v344_v33 }
 0x419   :  { %634 = vrot.lane.b32.xlu1 %v2354_v29, %s2234_s28 }
 0x421   :  { %664 = vrot.lane.b32.xlu1 %v2359_v31, %s2232_s24 }
 0x432   :  { %v282_v36 = vpop.f32.mrf.mxu3 }
 0x433   :  { %2002 = vmatmul.msk.f32.gmra.mxu2 %vm155_vm4, %v282_v36 }
 0x43a   :  { %v386_v37 = vpop.f32.mrf.mxu3 }
 0x43b   :  { %1999 = vmatmul.msk.f32.vlgmr.msra.gmra.mxu0 %vm155_vm4, %v386_v37 }
 0x442   :  { %v498_v43 = vpop.f32.mrf.mxu3 }
 0x443   :  { %v499_v44 = vadd.f32 %v498_v43, %v2387_v45 }
 0x445   :  { %v529_v46 = vsel %vm155_vm4, %v499_v44, -inf }
 0x473   :  { %v346_v38 = vpop.xlane.xlu1 %345 }
 0x474   :  { %v348_v40 = vsub.f32 %v339_v32, %v346_v38 }
 0x476   :  { %v351_v41 = vmul.f32 1.442695, %v348_v40 }
 0x478   :  { %2122 = vpow2.f32 %v351_v41  ;;  %v2446_v53 = vpop.f32.mrf.mxu2  ;;  %v102_v41 = vld [vmem:[%s2816_s4 + $0x18] sm:$0xff] }
 0x47e   :  { %v2123_v42 = vpop.eup %2122 }
 0x47f   :  { %v356_v29 = vsel %vm155_vm4, %v2123_v42, 0.0 }
 0x480   :  { %357 = vadd.xlane.f32.xlu0 %v356_v29 }
 0x488   :  { %530 = vmax.xlane.f32.xlu0 %v529_v46 }
 0x48b   :  { %v635_v31 = vpop.permute.xlu1 %634 }
 0x48c   :  { %2012 = vmatmul.msk.f32.vlgmr.msra.gmra.mxu2 %vm155_vm4, %v635_v31 }
 0x493   :  { %v665_v59 = vpop.permute.xlu1 %664 }
 0x49c   :  { %551 = vrot.lane.b32.xlu0 %v2372_v39, %s2235_s29 }
 0x4a4   :  { %662 = vrot.lane.b32.xlu0 %v2367_v35, %s2234_s28 }
 0x4b6   :  { %v2449_v57 = vpop.f32.mrf.mxu2 }
 0x4b8   :  { %v438_v31 = vpop.f32.mrf.mxu0 }
 0x4f3   :  { %v358_v47 = vpop.xlane.xlu0 %357 }
 0x4f4   :  { %2124 = vrcp.f32 %v358_v47 }
 0x4fa   :  { %v2125_v48 = vpop.eup %2124 }
 0x4fb   :  { %v531_v49 = vpop.xlane.xlu0 %530  ;;  %v362_v50 = vmul.f32 %v2125_v48, %v2123_v42 }
 0x4fc   :  { %v535_v51 = vsub.f32 %v499_v44, %v531_v49  ;;  %v468_v49 = vadd.f32 %v2446_v53, %v438_v31  ;;  %v897_v31 = vld [vmem:[%s2818_s6 + $0x8] sm:$0xff] }
 0x4fd   :  { %1998 = vmatmul.msk.f32.vlgmr.msrb.gmra.mxu1 %vm155_vm4, %v362_v50 }
 0x4fe   :  { %v537_v52 = vmul.f32 1.442695, %v535_v51  ;;  %v795_v51 = vperm.slane %v2335_v16, 3 }
 0x500   :  { %2126 = vpow2.f32 %v537_v52 }
 0x505   :  { %2006 = vmatmul.msk.f32.vlgmr.msra.gmra.mxu1 %vm155_vm4, %v502_v54 }
 0x506   :  { %v2127_v56 = vpop.eup %2126 }
 0x507   :  { %v541_v35 = vsel %vm155_vm4, %v2127_v56, 0.0 }
 0x508   :  { %542 = vadd.xlane.f32.xlu2 %v541_v35 }
 0x50e   :  { %v552_v58 = vpop.permute.xlu0 %551 }
 0x50f   :  { %572 = vmatpush.msra.mxu3 %v552_v58  ;;  %v659_v60 = vpop.f32.mrf.mxu2 }
 0x510   :  { %v660_v61 = vadd.f32 %v659_v60, %v2387_v45  ;;  %v2237_v60 = vmov 32.0  }
 0x511   :  { %2013 = vmatpush.xpose.msk.msrb.mxu3 %vm155_vm4, %v665_v59 }
 0x512   :  { %v690_v62 = vsel %vm155_vm4, %v660_v61, -inf }
 0x513   :  { %691 = vmax.xlane.f32.xlu0 %v690_v62 }
 0x516   :  { %v663_v1 = vpop.permute.xlu0 %662 }
 0x57a   :  { %v412_v63 = vpop.f32.mrf.mxu1 }
 0x57b   :  { %2000 = vmatmul.msk.f32.gmra.mxu0 %vm155_vm4, %v412_v63  ;;  %v543_v0 = vpop.xlane.xlu2 %542 }
 0x57c   :  { %2128 = vrcp.f32 %v543_v0 }
 0x582   :  { %v2129_v2 = vpop.eup %2128  ;;  %v526_v3 = vpop.f32.mrf.mxu1 }
 0x583   :  { %v549_v4 = vmul.f32 %v2129_v2, %v2127_v56  ;;  %v527_v5 = vadd.f32 %v526_v3, %v2387_v45 }
 0x585   :  { %2007 = vmatmul.msk.f32.vlgmr.msra.gmra.mxu3 %vm155_vm4, %v549_v4  ;;  %v532_v6 = vsel %vm155_vm4, %v527_v5, -inf }
 0x586   :  { %533 = vmax.xlane.f32.xlu1 %v532_v6  ;;  %v692_v7 = vpop.xlane.xlu0 %691  ;;  %785 = vmatpush.msra.mxu3 %v102_v41  ;;  %v903_v41 = vld [vmem:[%s2818_s6 + $0x38] sm:$0xff] }
 0x587   :  { %v696_v8 = vsub.f32 %v660_v61, %v692_v7  ;;  %920 = vmatpush.msra.mxu0 %v903_v41 }
 0x589   :  { %v698_v9 = vmul.f32 1.442695, %v696_v8 }
 0x58b   :  { %2130 = vpow2.f32 %v698_v9 }
 0x58d   :  { %2014 = vmatmul.msk.f32.vlgmr.msrb.gmra.mxu3 %vm155_vm4, %v663_v1 }
 0x591   :  { %v2131_v10 = vpop.eup %2130 }
 0x592   :  { %v702_v11 = vsel %vm155_vm4, %v2131_v10, 0.0 }
 0x593   :  { %703 = vadd.xlane.f32.xlu2 %v702_v11 }
 0x59f   :  { %712 = vrot.lane.b32.xlu1 %v2372_v39, %s2236_s30 }
 0x5f8   :  { %v441_v47 = vpop.f32.mrf.mxu0 }
 0x5f9   :  { %v534_v13 = vpop.xlane.xlu1 %533  ;;  %v471_v7 = vadd.f32 %v2449_v57, %v441_v47  ;;  %v858_v57 = vld [vmem:[%s2817_s5 + $0x8] sm:$0xff]  ;;  %v896_v47 = vld [vmem:[%s2818_s6] sm:$0xff] }
 0x5fa   :  { %v536_v14 = vsub.f32 %v527_v5, %v534_v13 }
 0x5fc   :  { %v539_v15 = vmul.f32 1.442695, %v536_v14  ;;  %v860_v14 = vld [vmem:[%s2817_s5 + $0x18] sm:$0xff] }
 0x5fe   :  { %2132 = vpow2.f32 %v539_v15  ;;  %v859_v15 = vld [vmem:[%s2817_s5 + $0x10] sm:$0xff] }
 0x604   :  { %v2133_v17 = vpop.eup %2132 }
 0x605   :  { %v544_v18 = vsel %vm155_vm4, %v2133_v17, 0.0 }
 0x606   :  { %545 = vadd.xlane.f32.xlu2 %v544_v18  ;;  %v704_v24 = vpop.xlane.xlu2 %703 }
 0x608   :  { %v574_v19 = vpop.f32.mrf.mxu3 }
 0x609   :  { %2009 = vmatmul.msk.f32.vlgmr.msrb.gmra.mxu0 %vm155_vm4, %v574_v19 }
 0x610   :  { %v687_v21 = vpop.f32.mrf.mxu3 }
 0x611   :  { %v688_v22 = vadd.f32 %v687_v21, %v2387_v45  ;;  %v713_v30 = vpop.permute.xlu1 %712 }
 0x613   :  { %v693_v39 = vsel %vm155_vm4, %v688_v22, -inf }
 0x614   :  { %694 = vmax.xlane.f32.xlu0 %v693_v39 }
 0x61e   :  { %577 = vrot.lane.b32.xlu2 %v2396_v55, %s2235_s29 }
 0x628   :  { %738 = vrot.lane.b32.xlu0 %v2396_v55, %s2236_s30 }
 0x679   :  { %v546_v25 = vpop.xlane.xlu2 %545 }
 0x67a   :  { %2134 = vrcp.f32 %v546_v25 }
 0x67b   :  { %2136 = vrcp.f32 %v704_v24 }
 0x680   :  { %v2135_v26 = vpop.eup %2134 }
 0x681   :  { %v550_v27 = vmul.f32 %v2135_v26, %v2133_v17  ;;  %v578_v28 = vpop.permute.xlu2 %577  ;;  %v2137_v32 = vpop.eup %2136 }
 0x682   :  { %598 = vmatpush.msrb.mxu1 %v578_v28  ;;  %v710_v36 = vmul.f32 %v2137_v32, %v2131_v10  ;;  %v851_v32 = vperm.slane %v2335_v16, 4 }
 0x683   :  { %2008 = vmatmul.msk.f32.vlgmr.msrb.gmra.mxu1 %vm155_vm4, %v550_v27 }
 0x684   :  { %733 = vmatpush.msra.mxu1 %v713_v30 }
 0x686   :  { %v626_v48 = vpop.f32.mrf.mxu0  ;;  %883 = vmatpush.msrb.mxu1 %v860_v14 }
 0x687   :  { %v695_v33 = vpop.xlane.xlu0 %694  ;;  %v632_v50 = vadd.f32 %v626_v48, %v468_v49 }
 0x688   :  { %v697_v34 = vsub.f32 %v688_v22, %v695_v33  ;;  %884 = vmatpush.msrb.mxu1 %v859_v15 }
 0x68a   :  { %v700_v37 = vmul.f32 1.442695, %v697_v34  ;;  %885 = vmatpush.msrb.mxu1 %v858_v57 }
 0x68b   :  { %2015 = vmatmul.msk.f32.vlgmr.msra.gmra.mxu1 %vm155_vm4, %v710_v36 }
 0x68c   :  { %2138 = vpow2.f32 %v700_v37  ;;  %v854_v37 = vperm.slane %v2335_v16, 5 }
 0x692   :  { %v2139_v55 = vpop.eup %2138 }
 0x693   :  { %v705_v38 = vsel %vm155_vm4, %v2139_v55, 0.0 }
 0x694   :  { %706 = vadd.xlane.f32.xlu2 %v705_v38 }
 0x69a   :  { %v739_v40 = vpop.permute.xlu0 %738 }
 0x69b   :  { %759 = vmatpush.msrb.mxu2 %v739_v40 }
 0x700   :  { %v600_v42 = vpop.f32.mrf.mxu1 }
 0x701   :  { %2010 = vmatmul.msk.f32.gmra.mxu0 %vm155_vm4, %v600_v42  ;;  %v902_v42 = vld [vmem:[%s2818_s6 + $0x30] sm:$0xff] }
 0x702   :  { %921 = vmatpush.msra.mxu0 %v902_v42 }
 0x707   :  { %v707_v29 = vpop.xlane.xlu2 %706 }
 0x708   :  { %2140 = vrcp.f32 %v707_v29  ;;  %v735_v43 = vpop.f32.mrf.mxu1  ;;  %v901_v29 = vld [vmem:[%s2818_s6 + $0x28] sm:$0xff] }
 0x709   :  { %2017 = vmatmul.msk.f32.vlgmr.msra.gmra.mxu3 %vm155_vm4, %v735_v43  ;;  %2142 = vrcp.f32 %v2237_v60  ;;  %922 = vmatpush.msra.mxu0 %v901_v29  ;;  %v900_v43 = vld [vmem:[%s2818_s6 + $0x20] sm:$0xff] }
 0x70b   :  { %923 = vmatpush.msra.mxu0 %v900_v43  ;;  %v2107_v43 = vld [vmem:[%s2819_s7 + $0x8] ss:$0 sm:$0xff] }
 0x70e   :  { %v2141_v44 = vpop.eup %2140 }
 0x70f   :  { %v711_v46 = vmul.f32 %v2141_v44, %v2139_v55  ;;  %v2143_v61 = vpop.eup %2142  ;;  %v899_v44 = vld [vmem:[%s2818_s6 + $0x18] sm:$0xff] }
 0x710   :  { %v807_v62 = vmul.f32 32.0, %v2143_v61  ;;  %vm811_vm6 = vweird.f32 %v2143_v61  ;;  %924 = vmatpush.msra.mxu0 %v899_v44 }
 0x711   :  { %2016 = vmatmul.msk.f32.vlgmr.msrb.gmra.mxu2 %vm155_vm4, %v711_v46  ;;  %v898_v46 = vld [vmem:[%s2818_s6 + $0x10] sm:$0xff] }
 0x712   :  { %v808_v63 = vsub.f32 1.0, %v807_v62  ;;  %925 = vmatpush.msra.mxu0 %v898_v46 }
 0x714   :  { %v809_v53 = vmul.f32 %v2143_v61, %v808_v63  ;;  %926 = vmatpush.msra.mxu0 %v897_v31 }
 0x716   :  { %v810_v0 = vadd.f32 %v2143_v61, %v809_v53  ;;  %927 = vmatpush.msra.mxu0 %v896_v47 }
 0x718   :  { %v2488_v1 = vsel %vm811_vm6, %v2143_v61, %v810_v0 }
 0x77e   :  { %v629_v6 = vpop.f32.mrf.mxu0 }
 0x77f   :  { %v633_v8 = vadd.f32 %v629_v6, %v471_v7 }
 0x78c   :  { %v787_v52 = vpop.f32.mrf.mxu3 }
 0x78d   :  { %v793_v54 = vadd.f32 %v787_v52, %v632_v50  ;;  %v2106_v52 = vld [vmem:[%s2820_s8] ss:$0 sm:$0xff] }
 0x78f   :  { %v796_v56 = vadd.f32 %v795_v51, %v793_v54 }
 0x791   :  { %v798_v35 = vadd.f32 %v796_v56, %v2342_v20 }
 0x793   :  { %v800_v58 = vsel %vm103_vm3, %v798_v35, 0.0 }
 0x794   :  { %801 = vadd.xlane.f32.xlu1 %v800_v58  ;;  %v761_v59 = vpop.f32.mrf.mxu2 }
 0x795   :  { %2018 = vmatmul.msk.f32.gmra.mxu3 %vm155_vm4, %v761_v59 }
 0x807   :  { %v802_v2 = vpop.xlane.xlu1 %801 }
 0x808   :  { %v813_v3 = vmul.f32 %v2488_v1, %v802_v2 }
 0x80a   :  { %v815_v20 = vsub.f32 %v798_v35, %v813_v3  ;;  %v904_v3 = vperm.slane %v2335_v16, 6 }
 0x80c   :  { %v817_v4 = vmul.f32 %v815_v20, %v815_v20 }
 0x80e   :  { %v819_v5 = vsel %vm103_vm3, %v817_v4, 0.0 }
 0x80f   :  { %820 = vadd.xlane.f32.xlu0 %v819_v5 }
 0x818   :  { %v790_v9 = vpop.f32.mrf.mxu3 }
 0x819   :  { %v794_v10 = vadd.f32 %v790_v9, %v633_v8 }
 0x81b   :  { %v797_v11 = vadd.f32 %v795_v51, %v794_v10 }
 0x81d   :  { %v799_v12 = vadd.f32 %v797_v11, %v2349_v23  ;;  %v857_v23 = vld [vmem:[%s2817_s5] sm:$0xff] }
 0x81e   :  { %886 = vmatpush.msrb.mxu1 %v857_v23 }
 0x81f   :  { %v803_v13 = vsel %vm103_vm3, %v799_v12, 0.0 }
 0x820   :  { %804 = vadd.xlane.f32.xlu2 %v803_v13 }
 0x882   :  { %v821_v17 = vpop.xlane.xlu0 %820 }
 0x883   :  { %v825_v18 = vmul.f32 %v821_v17, %v2488_v1 }
 0x885   :  { %v827_v19 = vadd.f32 1e-05, %v825_v18  ;;  %v2028_v18 = vld [vmem:[%s2815_s3 + $0x38] sm:$0xff] }
 0x886   :  { %1018 = vmatpush.msra.mxu2 %v2028_v18 }
 0x887   :  { %2144 = vrsqrt.f32 %v827_v19  ;;  %vm835_vm8 = vweird.f32 %v827_v19 }
 0x88d   :  { %v2145_v21 = vpop.eup %2144 }
 0x88e   :  { %v830_v22 = vmul.f32 %v2145_v21, %v827_v19  ;;  %vm836_vm7 = vweird.f32 %v2145_v21  ;;  %v2027_v19 = vld [vmem:[%s2815_s3 + $0x30] sm:$0xff] }
 0x88f   :  { %vm837_vm9 = vmor %vm835_vm8, %vm836_vm7  ;;  %1019 = vmatpush.msra.mxu2 %v2027_v19 }
 0x890   :  { %v831_v39 = vmul.f32 %v2145_v21, %v830_v22  ;;  %v2025_v22 = vld [vmem:[%s2815_s3 + $0x20] sm:$0xff] }
 0x892   :  { %v832_v24 = vmul.f32 0.5, %v831_v39  ;;  %v2564_v39 = vld [vmem:[%s2819_s7 + $0x10] sm:$0xff] }
 0x893   :  { %v805_v25 = vpop.xlane.xlu2 %804 }
 0x894   :  { %v833_v26 = vsub.f32 1.5, %v832_v24  ;;  %v814_v27 = vmul.f32 %v2488_v1, %v805_v25  ;;  %v1034_v24 = vperm.slane %v2564_v39, 1 }
 0x896   :  { %v834_v28 = vmul.f32 %v2145_v21, %v833_v26  ;;  %v816_v30 = vsub.f32 %v799_v12, %v814_v27  ;;  %1036 = vrot.lane.b32.xlu0 %v1034_v24, %s2224_s14 }
 0x898   :  { %v838_v33 = vsel %vm837_vm9, %v2145_v21, %v834_v28  ;;  %v818_v34 = vmul.f32 %v816_v30, %v816_v30  ;;  %v2026_v21 = vld [vmem:[%s2815_s3 + $0x28] sm:$0xff] }
 0x899   :  { %v849_v36 = vmul.f32 %v838_v33, %v815_v20  ;;  %1020 = vmatpush.msra.mxu2 %v2026_v21 }
 0x89a   :  { %v822_v55 = vsel %vm103_vm3, %v818_v34, 0.0 }
 0x89b   :  { %v852_v38 = vmul.f32 %v851_v32, %v849_v36  ;;  %823 = vadd.xlane.f32.xlu2 %v822_v55  ;;  %1021 = vmatpush.msra.mxu2 %v2025_v22 }
 0x89d   :  { %v855_v40 = vadd.f32 %v854_v37, %v852_v38 }
 0x89f   :  { %2019 = vmatmul.msk.f32.vlgmr.msrb.gmra.mxu1 %vm103_vm3, %v855_v40 }
 0x90e   :  { %v824_v48 = vpop.xlane.xlu2 %823 }
 0x90f   :  { %v826_v49 = vmul.f32 %v824_v48, %v2488_v1 }
 0x911   :  { %v828_v50 = vadd.f32 1e-05, %v826_v49 }
 0x913   :  { %2146 = vrsqrt.f32 %v828_v50  ;;  %vm845_vm12 = vweird.f32 %v828_v50 }
 0x919   :  { %v2147_v51 = vpop.eup %2146 }
 0x91a   :  { %v840_v54 = vmul.f32 %v2147_v51, %v828_v50  ;;  %vm846_vm11 = vweird.f32 %v2147_v51 }
 0x91b   :  { %vm847_vm13 = vmor %vm845_vm12, %vm846_vm11 }
 0x91c   :  { %v841_v56 = vmul.f32 %v2147_v51, %v840_v54  ;;  %v888_v35 = vpop.f32.mrf.mxu1  ;;  %v1029_v54 = vperm.slane %v2564_v39, 0 }
 0x91d   :  { %v889_v58 = vadd.f32 %v2106_v52, %v888_v35  ;;  %v1037_v35 = vpop.permute.xlu0 %1036 }
 0x91e   :  { %v842_v59 = vmul.f32 0.5, %v841_v56 }
 0x91f   :  { %v894_v60 = vmax.f32 %v889_v58, 0.0 }
 0x920   :  { %v843_v61 = vsub.f32 1.5, %v842_v59 }
 0x921   :  { %2021 = vmatmul.msk.f32.vlgmr.msra.gmra.mxu0 %vm905_vm10, %v894_v60 }
 0x922   :  { %v844_v62 = vmul.f32 %v2147_v51, %v843_v61 }
 0x924   :  { %v848_v63 = vsel %vm847_vm13, %v2147_v51, %v844_v62 }
 0x925   :  { %v850_v53 = vmul.f32 %v848_v63, %v816_v30 }
 0x927   :  { %v853_v0 = vmul.f32 %v851_v32, %v850_v53 }
 0x929   :  { %v856_v2 = vadd.f32 %v854_v37, %v853_v0 }
 0x92b   :  { %2020 = vmatmul.msk.f32.gmra.mxu1 %vm103_vm3, %v856_v2 }
 0x99e   :  { %v929_v20 = vpop.f32.mrf.mxu0 }
 0x99f   :  { %v930_v4 = vadd.f32 %v929_v20, %v904_v3 }
 0x9a1   :  { %v935_v5 = vadd.f32 %v930_v4, %v855_v40  ;;  %v981_v40 = vperm.slane %v2335_v16, 7 }
 0x9a3   :  { %v937_v6 = vsel %vm103_vm3, %v935_v5, 0.0 }
 0x9a4   :  { %938 = vadd.xlane.f32.xlu1 %v937_v6 }
 0x9a8   :  { %v891_v7 = vpop.f32.mrf.mxu1 }
 0x9a9   :  { %v892_v8 = vadd.f32 %v2106_v52, %v891_v7  ;;  %v1041_v7 = vperm.slane %v2564_v39, 2 }
 0x9ab   :  { %v895_v9 = vmax.f32 %v892_v8, 0.0 }
 0x9ad   :  { %2022 = vmatmul.msk.f32.gmra.mxu0 %vm905_vm10, %v895_v9 }
 0xa17   :  { %v939_v10 = vpop.xlane.xlu1 %938 }
 0xa18   :  { %v943_v11 = vmul.f32 %v939_v10, %v2488_v1 }
 0xa1a   :  { %v945_v12 = vsub.f32 %v935_v5, %v943_v11 }
 0xa1c   :  { %v947_v13 = vmul.f32 %v945_v12, %v945_v12 }
 0xa1e   :  { %v949_v14 = vsel %vm103_vm3, %v947_v13, 0.0 }
 0xa1f   :  { %950 = vadd.xlane.f32.xlu2 %v949_v14 }
 0xa2a   :  { %v932_v15 = vpop.f32.mrf.mxu0 }
 0xa2b   :  { %v933_v57 = vadd.f32 %v932_v15, %v904_v3 }
 0xa2d   :  { %v936_v23 = vadd.f32 %v933_v57, %v856_v2 }
 0xa2f   :  { %v940_v17 = vsel %vm103_vm3, %v936_v23, 0.0 }
 0xa30   :  { %941 = vadd.xlane.f32.xlu1 %v940_v17 }
 0xa92   :  { %v951_v25 = vpop.xlane.xlu2 %950 }
 0xa93   :  { %v955_v26 = vmul.f32 %v951_v25, %v2488_v1 }
 0xa95   :  { %v957_v27 = vadd.f32 1e-05, %v955_v26 }
 0xa97   :  { %2148 = vrsqrt.f32 %v957_v27  ;;  %vm965_vm15 = vweird.f32 %v957_v27 }
 0xa9d   :  { %v2149_v28 = vpop.eup %2148 }
 0xa9e   :  { %v960_v30 = vmul.f32 %v2149_v28, %v957_v27  ;;  %vm966_vm14 = vweird.f32 %v2149_v28 }
 0xa9f   :  { %vm967_vm1 = vmor %vm965_vm15, %vm966_vm14 }
 0xaa0   :  { %v961_v32 = vmul.f32 %v2149_v28, %v960_v30 }
 0xaa2   :  { %v962_v33 = vmul.f32 0.5, %v961_v32 }
 0xaa3   :  { %v942_v34 = vpop.xlane.xlu1 %941 }
 0xaa4   :  { %v963_v36 = vsub.f32 1.5, %v962_v33  ;;  %v944_v37 = vmul.f32 %v942_v34, %v2488_v1 }
 0xaa6   :  { %v964_v55 = vmul.f32 %v2149_v28, %v963_v36  ;;  %v946_v38 = vsub.f32 %v936_v23, %v944_v37 }
 0xaa8   :  { %v968_v41 = vsel %vm967_vm1, %v2149_v28, %v964_v55  ;;  %v948_v42 = vmul.f32 %v946_v38, %v946_v38 }
 0xaa9   :  { %v979_v29 = vmul.f32 %v968_v41, %v945_v12 }
 0xaaa   :  { %v952_v44 = vsel %vm103_vm3, %v948_v42, 0.0 }
 0xaab   :  { %v982_v46 = vmul.f32 %v981_v40, %v979_v29  ;;  %953 = vadd.xlane.f32.xlu2 %v952_v44 }
 0xaad   :  { %v2575_v31 = vadd.f32 %v2107_v43, %v982_v46 }
 0xaaf   :  { %2033 = vmatmul.msk.f32.vlgmr.msra.gmra.mxu2 %vm103_vm3, %v2575_v31 }
 0xb1e   :  { %v954_v47 = vpop.xlane.xlu2 %953 }
 0xb1f   :  { %v956_v16 = vmul.f32 %v954_v47, %v2488_v1 }
 0xb21   :  { %v958_v48 = vadd.f32 1e-05, %v956_v16 }
 0xb23   :  { %2150 = vrsqrt.f32 %v958_v48  ;;  %vm975_vm5 = vweird.f32 %v958_v48 }
 0xb29   :  { %v2151_v49 = vpop.eup %2150 }
 0xb2a   :  { %v970_v50 = vmul.f32 %v2151_v49, %v958_v48  ;;  %vm976_vm2 = vweird.f32 %v2151_v49 }
 0xb2b   :  { %vm977_vm6 = vmor %vm975_vm5, %vm976_vm2 }
 0xb2c   :  { %v971_v51 = vmul.f32 %v2151_v49, %v970_v50 }
 0xb2e   :  { %v972_v52 = vmul.f32 0.5, %v971_v51 }
 0xb30   :  { %v973_v56 = vsub.f32 1.5, %v972_v52 }
 0xb32   :  { %v974_v58 = vmul.f32 %v2151_v49, %v973_v56  ;;  %v1023_v59 = vpop.f32.mrf.mxu2 }
 0xb33   :  { %v1030_v60 = vadd.f32 %v1029_v54, %v1023_v59  ;;  %v2581_v61 = vadd.f32 %v1037_v35, %v1023_v59 }
 0xb34   :  { %v978_v62 = vsel %vm977_vm6, %v2151_v49, %v974_v58 }
 0xb35   :  { %v2583_v63 = vmul.f32 0.35355338, %v1030_v60  ;;  %1182 = vrot.lane.b32.xlu2 %v2581_v61, %s2227_s1  ;;  %1049 = vrot.lane.b32.xlu1 %v2581_v61, %s2225_s19  ;;  %v980_v53 = vmul.f32 %v978_v62, %v946_v38 }
 0xb37   :  { %1180 = vrot.lane.b32.xlu0 %v2583_v63, %s2226_s20  ;;  %v983_v0 = vmul.f32 %v981_v40, %v980_v53 }
 0xb39   :  { %v2591_v2 = vadd.f32 %v2107_v43, %v983_v0 }
 0xb3b   :  { %2034 = vmatmul.msk.f32.gmra.mxu2 %vm103_vm3, %v2591_v2 }
 0xb8f   :  { %v1183_v20 = vpop.permute.xlu2 %1182 }
 0xba7   :  { %v1050_v3 = vpop.permute.xlu1 %1049 }
 0xba8   :  { %2035 = vmatpush.xpose.msk.msrb.mxu3 %vm155_vm4, %v1050_v3 }
 0xba9   :  { %v1181_v4 = vpop.permute.xlu0 %1180 }
 0xbab   :  { %2036 = vmatmul.msk.f32.vlgmr.msrb.gmra.mxu3 %vm155_vm4, %v2583_v63 }
 0xbac   :  { %2041 = vmatpush.xpose.msk.msra.mxu3 %vm155_vm4, %v1183_v20 }
 0xbb3   :  { %2042 = vmatmul.msk.f32.vlgmr.msra.gmra.mxu3 %vm155_vm4, %v1181_v4  ;;  %v2029_v4 = vld [vmem:[%s2816_s4 + $0x20] sm:$0xff] }
 0xbbe   :  { %v1026_v5 = vpop.f32.mrf.mxu2 }
 0xbbf   :  { %v2600_v6 = vadd.f32 %v1037_v35, %v1026_v5  ;;  %v1031_v8 = vadd.f32 %v1029_v54, %v1026_v5 }
 0xbc1   :  { %1077 = vrot.lane.b32.xlu0 %v2600_v6, %s2225_s19  ;;  %v1033_v9 = vmul.f32 0.35355338, %v1031_v8 }
 0xbc9   :  { %1043 = vrot.lane.b32.xlu0 %v1041_v7, %s2228_s21 }
 0xbd1   :  { %1210 = vrot.lane.b32.xlu0 %v2600_v6, %s2227_s1 }
 0xbd9   :  { %1208 = vrot.lane.b32.xlu0 %v1033_v9, %s2226_s20 }
 0xc2e   :  { %v1073_v10 = vpop.f32.mrf.mxu3 }
 0xc2f   :  { %v1074_v11 = vadd.f32 %v1073_v10, %v2387_v45 }
 0xc31   :  { %v1104_v12 = vsel %vm155_vm4, %v1074_v11, -inf }
 0xc32   :  { %1105 = vmax.xlane.f32.xlu2 %v1104_v12 }
 0xc33   :  { %v1078_v13 = vpop.permute.xlu0 %1077 }
 0xc34   :  { %2037 = vmatpush.xpose.msk.msra.mxu1 %vm155_vm4, %v1078_v13 }
 0xc36   :  { %v1205_v14 = vpop.f32.mrf.mxu3 }
 0xc37   :  { %v1206_v15 = vadd.f32 %v1205_v14, %v2387_v45  ;;  %2038 = vmatmul.msk.f32.vlgmr.msra.gmra.mxu1 %vm155_vm4, %v1033_v9 }
 0xc39   :  { %v1236_v57 = vsel %vm155_vm4, %v1206_v15, -inf }
 0xc3a   :  { %1237 = vmax.xlane.f32.xlu1 %v1236_v57 }
 0xc3b   :  { %v1044_v23 = vpop.permute.xlu0 %1043 }
 0xc3c   :  { %v2617_v19 = vadd.f32 %v1044_v23, %v1023_v59  ;;  %v2627_v36 = vadd.f32 %v1044_v23, %v1026_v5  ;;  %v2030_v5 = vld [vmem:[%s2816_s4 + $0x28] sm:$0xff] }
 0xc3d   :  { %1331 = vmatpush.msrb.mxu3 %v2030_v5 }
 0xc43   :  { %v1211_v17 = vpop.permute.xlu0 %1210 }
 0xc44   :  { %2043 = vmatpush.xpose.msk.msrb.mxu1 %vm155_vm4, %v1211_v17 }
 0xc48   :  { %1360 = vmatpush.msra.mxu1 %v2029_v4 }
 0xc4b   :  { %v1209_v18 = vpop.permute.xlu0 %1208 }
 0xc4c   :  { %2044 = vmatmul.msk.f32.vlgmr.msrb.gmra.mxu1 %vm155_vm4, %v1209_v18 }
 0xc53   :  { %1127 = vrot.lane.b32.xlu1 %v2617_v19, %s2228_s21 }
 0xc5b   :  { %1370 = vrot.lane.b32.xlu1 %v2581_v61, %s2230_s22 }
 0xca5   :  { %v1106_v21 = vpop.xlane.xlu2 %1105 }
 0xca6   :  { %v1110_v22 = vsub.f32 %v1074_v11, %v1106_v21 }
 0xca8   :  { %v1112_v24 = vmul.f32 1.442695, %v1110_v22 }
 0xcaa   :  { %2152 = vpow2.f32 %v1112_v24 }
 0xcad   :  { %v1238_v25 = vpop.xlane.xlu1 %1237 }
 0xcae   :  { %v1242_v26 = vsub.f32 %v1206_v15, %v1238_v25 }
 0xcb0   :  { %v2153_v27 = vpop.eup %2152  ;;  %v1244_v28 = vmul.f32 1.442695, %v1242_v26 }
 0xcb1   :  { %v1116_v30 = vsel %vm155_vm4, %v2153_v27, 0.0 }
 0xcb2   :  { %2154 = vpow2.f32 %v1244_v28  ;;  %1117 = vadd.xlane.f32.xlu0 %v1116_v30 }
 0xcb4   :  { %v1101_v37 = vpop.f32.mrf.mxu1 }
 0xcb5   :  { %v1102_v40 = vadd.f32 %v1101_v37, %v2387_v45 }
 0xcb7   :  { %v1107_v42 = vsel %vm155_vm4, %v1102_v40, -inf }
 0xcb8   :  { %v2155_v32 = vpop.eup %2154 }
 0xcb9   :  { %v1248_v33 = vsel %vm155_vm4, %v2155_v32, 0.0 }
 0xcba   :  { %1249 = vadd.xlane.f32.xlu2 %v1248_v33 }
 0xcc5   :  { %v1128_v34 = vpop.permute.xlu1 %1127 }
 0xcc6   :  { %1368 = vrot.lane.b32.xlu0 %v2583_v63, %s2233_s25  ;;  %1148 = vmatpush.msrb.mxu0 %v1128_v34 }
 0xcc9   :  { %v1233_v55 = vpop.f32.mrf.mxu1 }
 0xcca   :  { %v1234_v38 = vadd.f32 %v1233_v55, %v2387_v45 }
 0xccc   :  { %v1239_v41 = vsel %vm155_vm4, %v1234_v38, -inf }
 0xccd   :  { %v1371_v49 = vpop.permute.xlu1 %1370 }
 0xcce   :  { %1154 = vrot.lane.b32.xlu0 %v2627_v36, %s2228_s21 }
 0xcd2   :  { %1258 = vrot.lane.b32.xlu2 %v2617_v19, %s2231_s23 }
 0xcf8   :  { %1240 = vmax.xlane.f32.xlu0 %v1239_v41 }
 0xcfb   :  { %1108 = vmax.xlane.f32.xlu2 %v1107_v42 }
 0xd0c   :  { %1396 = vrot.lane.b32.xlu0 %v1033_v9, %s2233_s25 }
 0xd14   :  { %1446 = vrot.lane.b32.xlu0 %v2617_v19, %s2235_s29 }
 0xd1c   :  { %1557 = vrot.lane.b32.xlu0 %v1033_v9, %s2234_s28 }
 0xd25   :  { %v1118_v29 = vpop.xlane.xlu0 %1117 }
 0xd26   :  { %2156 = vrcp.f32 %v1118_v29 }
 0xd2c   :  { %v2157_v43 = vpop.eup %2156 }
 0xd2d   :  { %v1124_v44 = vmul.f32 %v2157_v43, %v2153_v27  ;;  %v1250_v46 = vpop.xlane.xlu2 %1249 }
 0xd2e   :  { %2158 = vrcp.f32 %v1250_v46 }
 0xd2f   :  { %2039 = vmatmul.msk.f32.vlgmr.msrb.gmra.mxu0 %vm155_vm4, %v1124_v44  ;;  %v2031_v44 = vld [vmem:[%s2816_s4 + $0x30] sm:$0xff] }
 0xd30   :  { %1519 = vmatpush.msra.mxu3 %v2031_v44  ;;  %v2069_v44 = vld [vmem:[%s2817_s5 + $0x30] sm:$0xff] }
 0xd34   :  { %v2159_v47 = vpop.eup %2158 }
 0xd35   :  { %v1256_v16 = vmul.f32 %v2159_v47, %v2155_v32  ;;  %v1259_v48 = vpop.permute.xlu2 %1258 }
 0xd36   :  { %1279 = vmatpush.msra.mxu0 %v1259_v48 }
 0xd37   :  { %2045 = vmatmul.msk.f32.vlgmr.msra.gmra.mxu0 %vm155_vm4, %v1256_v16 }
 0xd38   :  { %2051 = vmatpush.xpose.msk.msrb.mxu0 %vm155_vm4, %v1371_v49  ;;  %v1369_v50 = vpop.permute.xlu0 %1368 }
 0xd3f   :  { %2052 = vmatmul.msk.f32.vlgmr.msrb.gmra.mxu0 %vm155_vm4, %v1369_v50 }
 0xd40   :  { %v1155_v51 = vpop.permute.xlu0 %1154 }
 0xd41   :  { %1175 = vmatpush.msrb.mxu2 %v1155_v51 }
 0xd6b   :  { %v1241_v52 = vpop.xlane.xlu0 %1240 }
 0xd6c   :  { %v1243_v35 = vsub.f32 %v1234_v38, %v1241_v52 }
 0xd6e   :  { %v1109_v54 = vpop.xlane.xlu2 %1108  ;;  %v1246_v59 = vmul.f32 1.442695, %v1243_v35 }
 0xd6f   :  { %v1111_v56 = vsub.f32 %v1102_v40, %v1109_v54 }
 0xd71   :  { %v1114_v58 = vmul.f32 1.442695, %v1111_v56 }
 0xd73   :  { %2160 = vpow2.f32 %v1114_v58 }
 0xd74   :  { %2162 = vpow2.f32 %v1246_v59 }
 0xd79   :  { %v2161_v60 = vpop.eup %2160 }
 0xd7a   :  { %v1119_v62 = vsel %vm155_vm4, %v2161_v60, 0.0  ;;  %v2163_v0 = vpop.eup %2162 }
 0xd7b   :  { %1120 = vadd.xlane.f32.xlu1 %v1119_v62  ;;  %v1251_v3 = vsel %vm155_vm4, %v2163_v0, 0.0 }
 0xd7e   :  { %v1397_v53 = vpop.permute.xlu0 %1396 }
 0xd83   :  { %1252 = vadd.xlane.f32.xlu1 %v1251_v3 }
 0xd86   :  { %v1447_v20 = vpop.permute.xlu0 %1446 }
 0xd87   :  { %1467 = vmatpush.msra.mxu0 %v1447_v20 }
 0xd8e   :  { %v1558_v34 = vpop.permute.xlu0 %1557 }
 0xd9c   :  { %1398 = vrot.lane.b32.xlu1 %v2600_v6, %s2230_s22 }
 0xda4   :  { %1531 = vrot.lane.b32.xlu1 %v2581_v61, %s2232_s24 }
 0xdac   :  { %v1150_v7 = vpop.f32.mrf.mxu0  ;;  %1529 = vrot.lane.b32.xlu1 %v2583_v63, %s2234_s28 }
 0xdad   :  { %2049 = vmatmul.msk.f32.vlgmr.msra.gmra.mxu1 %vm155_vm4, %v1150_v7 }
 0xdb4   :  { %v1281_v8 = vpop.f32.mrf.mxu0  ;;  %1559 = vrot.lane.b32.xlu1 %v2600_v6, %s2232_s24 }
 0xdb5   :  { %2047 = vmatmul.msk.f32.vlgmr.msrb.gmra.mxu3 %vm155_vm4, %v1281_v8 }
 0xdbc   :  { %v1393_v9 = vpop.f32.mrf.mxu0 }
 0xdbd   :  { %v1394_v10 = vadd.f32 %v1393_v9, %v2387_v45 }
 0xdbf   :  { %v1424_v11 = vsel %vm155_vm4, %v1394_v10, -inf }
 0xdc0   :  { %1425 = vmax.xlane.f32.xlu2 %v1424_v11  ;;  %v2032_v11 = vld [vmem:[%s2816_s4 + $0x38] sm:$0xff] }
 0xdd8   :  { %1284 = vrot.lane.b32.xlu2 %v2627_v36, %s2231_s23 }
 0xdee   :  { %v1121_v61 = vpop.xlane.xlu1 %1120 }
 0xdef   :  { %2164 = vrcp.f32 %v1121_v61 }
 0xdf5   :  { %v2165_v63 = vpop.eup %2164 }
 0xdf6   :  { %v1125_v12 = vmul.f32 %v2165_v63, %v2161_v60  ;;  %v1253_v13 = vpop.xlane.xlu1 %1252 }
 0xdf7   :  { %2166 = vrcp.f32 %v1253_v13 }
 0xdf8   :  { %2040 = vmatmul.msk.f32.vlgmr.msrb.gmra.mxu2 %vm155_vm4, %v1125_v12 }
 0xdfd   :  { %v2167_v21 = vpop.eup %2166 }
 0xdfe   :  { %v1257_v22 = vmul.f32 %v2167_v21, %v2163_v0  ;;  %v1690_v21 = vperm.slane %v2564_v39, 3 }
 0xe0e   :  { %v1399_v14 = vpop.permute.xlu1 %1398 }
 0xe16   :  { %v1532_v6 = vpop.permute.xlu1 %1531 }
 0xe17   :  { %2059 = vmatpush.xpose.msk.msrb.mxu1 %vm155_vm4, %v1532_v6 }
 0xe1e   :  { %v1530_v15 = vpop.permute.xlu1 %1529 }
 0xe26   :  { %v1560_v57 = vpop.permute.xlu1 %1559 }
 0xe27   :  { %2061 = vmatpush.xpose.msk.msrb.mxu0 %vm155_vm4, %v1560_v57 }
 0xe2a   :  { %v2683_v40 = vpop.f32.mrf.mxu1 }
 0xe33   :  { %v1426_v23 = vpop.xlane.xlu2 %1425 }
 0xe34   :  { %v1430_v17 = vsub.f32 %v1394_v10, %v1426_v23 }
 0xe36   :  { %v1432_v18 = vmul.f32 1.442695, %v1430_v17 }
 0xe38   :  { %2168 = vpow2.f32 %v1432_v18 }
 0xe3b   :  { %v1285_v24 = vpop.permute.xlu2 %1284 }
 0xe3c   :  { %1305 = vmatpush.msra.mxu2 %v1285_v24 }
 0xe3d   :  { %2046 = vmatmul.msk.f32.vlgmr.msra.gmra.mxu2 %vm155_vm4, %v1257_v22 }
 0xe3e   :  { %v2169_v25 = vpop.eup %2168  ;;  %2053 = vmatpush.xpose.msk.msrb.mxu2 %vm155_vm4, %v1399_v14 }
 0xe3f   :  { %v1436_v26 = vsel %vm155_vm4, %v2169_v25, 0.0 }
 0xe40   :  { %1437 = vadd.xlane.f32.xlu2 %v1436_v26 }
 0xe45   :  { %2054 = vmatmul.msk.f32.vlgmr.msrb.gmra.mxu2 %vm155_vm4, %v1397_v53 }
 0xe7b   :  { %v1177_v27 = vpop.f32.mrf.mxu2 }
 0xe7c   :  { %2050 = vmatmul.msk.f32.gmra.mxu1 %vm155_vm4, %v1177_v27 }
 0xe84   :  { %2060 = vmatmul.msk.f32.vlgmr.msrb.gmra.mxu1 %vm155_vm4, %v1530_v15 }
 0xeb3   :  { %v1438_v28 = vpop.xlane.xlu2 %1437 }
 0xeb4   :  { %2170 = vrcp.f32 %v1438_v28 }
 0xeba   :  { %v2171_v30 = vpop.eup %2170 }
 0xebb   :  { %v1444_v32 = vmul.f32 %v2171_v30, %v2169_v25 }
 0xebd   :  { %2055 = vmatmul.msk.f32.vlgmr.msra.gmra.mxu0 %vm155_vm4, %v1444_v32 }
 0xebe   :  { %1680 = vmatpush.msra.mxu0 %v2032_v11 }
 0xec0   :  { %v1307_v33 = vpop.f32.mrf.mxu2 }
 0xec1   :  { %2048 = vmatmul.msk.f32.gmra.mxu3 %vm155_vm4, %v1307_v33 }
 0xec5   :  { %2062 = vmatmul.msk.f32.vlgmr.msrb.gmra.mxu0 %vm155_vm4, %v1558_v34 }
 0xec8   :  { %v1421_v37 = vpop.f32.mrf.mxu2 }
 0xec9   :  { %v1422_v55 = vadd.f32 %v1421_v37, %v2387_v45 }
 0xecb   :  { %v1427_v38 = vsel %vm155_vm4, %v1422_v55, -inf }
 0xecc   :  { %1428 = vmax.xlane.f32.xlu1 %v1427_v38 }
 0xee5   :  { %1607 = vrot.lane.b32.xlu1 %v2617_v19, %s2236_s30 }
 0xef9   :  { %v2685_v41 = vpop.f32.mrf.mxu1 }
 0xf01   :  { %v1554_v42 = vpop.f32.mrf.mxu1 }
 0xf02   :  { %v1555_v29 = vadd.f32 %v1554_v42, %v2387_v45 }
 0xf04   :  { %v1585_v43 = vsel %vm155_vm4, %v1555_v29, -inf }
 0xf05   :  { %1586 = vmax.xlane.f32.xlu0 %v1585_v43 }
 0xf3a   :  { %v1469_v46 = vpop.f32.mrf.mxu0 }
 0xf3b   :  { %2057 = vmatmul.msk.f32.vlgmr.msra.gmra.mxu3 %vm155_vm4, %v1469_v46  ;;  %v2068_v46 = vld [vmem:[%s2817_s5 + $0x28] sm:$0xff] }
 0xf3f   :  { %v1429_v47 = vpop.xlane.xlu1 %1428 }
 0xf40   :  { %v1431_v19 = vsub.f32 %v1422_v55, %v1429_v47 }
 0xf42   :  { %v1434_v16 = vmul.f32 1.442695, %v1431_v19  ;;  %v1582_v35 = vpop.f32.mrf.mxu0 }
 0xf43   :  { %v1583_v58 = vadd.f32 %v1582_v35, %v2387_v45 }
 0xf44   :  { %2172 = vpow2.f32 %v1434_v16 }
 0xf45   :  { %v1588_v59 = vsel %vm155_vm4, %v1583_v58, -inf }
 0xf4a   :  { %v2173_v48 = vpop.eup %2172 }
 0xf4b   :  { %v1439_v49 = vsel %vm155_vm4, %v2173_v48, 0.0 }
 0xf4c   :  { %1440 = vadd.xlane.f32.xlu2 %v1439_v49 }
 0xf57   :  { %v1608_v7 = vpop.permute.xlu1 %1607 }
 0xf78   :  { %v1587_v50 = vpop.xlane.xlu0 %1586 }
 0xf79   :  { %v1591_v51 = vsub.f32 %v1555_v29, %v1587_v50 }
 0xf7b   :  { %v1593_v52 = vmul.f32 1.442695, %v1591_v51 }
 0xf7d   :  { %2174 = vpow2.f32 %v1593_v52 }
 0xf83   :  { %v2175_v54 = vpop.eup %2174 }
 0xf84   :  { %v1597_v56 = vsel %vm155_vm4, %v2175_v54, 0.0 }
 0xf85   :  { %1598 = vadd.xlane.f32.xlu2 %v1597_v56 }
 0xf8d   :  { %1589 = vmax.xlane.f32.xlu2 %v1588_v59 }
 0xfa5   :  { %1472 = vrot.lane.b32.xlu2 %v2627_v36, %s2235_s29 }
 0xfbf   :  { %v1441_v60 = vpop.xlane.xlu2 %1440 }
 0xfc0   :  { %2176 = vrcp.f32 %v1441_v60 }
 0xfc6   :  { %v2177_v20 = vpop.eup %2176 }
 0xfc7   :  { %v1445_v4 = vmul.f32 %v2177_v20, %v2173_v48 }
 0xff8   :  { %v1599_v62 = vpop.xlane.xlu2 %1598 }
0x1000   :  { %v1590_v53 = vpop.xlane.xlu2 %1589 }
0x1001   :  { %v1592_v0 = vsub.f32 %v1583_v58, %v1590_v53 }
0x1003   :  { %v1595_v3 = vmul.f32 1.442695, %v1592_v0 }
0x1005   :  { %2178 = vpow2.f32 %v1595_v3  ;;  %v1742_v3 = vperm.slane %v2564_v39, 5 }
0x1006   :  { %2180 = vrcp.f32 %v1599_v62  ;;  %v1739_v62 = vperm.slane %v2564_v39, 4 }
0x1008   :  { %v1473_v5 = vpop.permute.xlu2 %1472 }
0x1009   :  { %1493 = vmatpush.msra.mxu2 %v1473_v5  ;;  %v2081_v5 = vld [vmem:[%s2818_s6 + $0x78] sm:$0xff] }
0x100a   :  { %2056 = vmatmul.msk.f32.vlgmr.msra.gmra.mxu2 %vm155_vm4, %v1445_v4  ;;  %1810 = vmatpush.msrb.mxu3 %v2081_v5 }
0x100b   :  { %v2179_v45 = vpop.eup %2178  ;;  %1628 = vmatpush.msrb.mxu2 %v1608_v7  ;;  %v2080_v7 = vld [vmem:[%s2818_s6 + $0x70] sm:$0xff] }
0x100c   :  { %v1600_v8 = vsel %vm155_vm4, %v2179_v45, 0.0  ;;  %v2181_v9 = vpop.eup %2180  ;;  %1811 = vmatpush.msrb.mxu3 %v2080_v7 }
0x100d   :  { %1601 = vadd.xlane.f32.xlu0 %v1600_v8  ;;  %v1605_v10 = vmul.f32 %v2181_v9, %v2175_v54  ;;  %v2078_v8 = vld [vmem:[%s2818_s6 + $0x60] sm:$0xff]  ;;  %v2077_v9 = vld [vmem:[%s2818_s6 + $0x58] sm:$0xff] }
0x1012   :  { %2063 = vmatmul.msk.f32.vlgmr.msrb.gmra.mxu2 %vm155_vm4, %v1605_v10 }
0x1021   :  { %1633 = vrot.lane.b32.xlu0 %v2627_v36, %s2236_s30  ;;  %v1333_v36 = vpop.f32.mrf.mxu3 }
0x1022   :  { %v1363_v23 = vadd.f32 %v2683_v40, %v1333_v36 }
0x1029   :  { %v1336_v15 = vpop.f32.mrf.mxu3 }
0x102a   :  { %v1366_v30 = vadd.f32 %v2685_v41, %v1336_v15  ;;  %v2070_v41 = vld [vmem:[%s2817_s5 + $0x38] sm:$0xff] }
0x102b   :  { %1773 = vmatpush.msra.mxu2 %v2070_v41 }
0x102d   :  { %1774 = vmatpush.msra.mxu2 %v2069_v44 }
0x102f   :  { %1775 = vmatpush.msra.mxu2 %v2068_v46 }
0x1031   :  { %v1521_v57 = vpop.f32.mrf.mxu3 }
0x1032   :  { %v1527_v17 = vadd.f32 %v1521_v57, %v1363_v23 }
0x1080   :  { %v1602_v61 = vpop.xlane.xlu0 %1601 }
0x1081   :  { %2182 = vrcp.f32 %v1602_v61 }
0x1087   :  { %v2183_v12 = vpop.eup %2182 }
0x1088   :  { %v1606_v13 = vmul.f32 %v2183_v12, %v2179_v45  ;;  %v2079_v45 = vld [vmem:[%s2818_s6 + $0x68] sm:$0xff] }
0x1089   :  { %1812 = vmatpush.msrb.mxu3 %v2079_v45  ;;  %v2075_v12 = vld [vmem:[%s2818_s6 + $0x48] sm:$0xff] }
0x108b   :  { %1813 = vmatpush.msrb.mxu3 %v2078_v8 }
0x108d   :  { %v1495_v63 = vpop.f32.mrf.mxu2  ;;  %1814 = vmatpush.msrb.mxu3 %v2077_v9 }
0x108e   :  { %2058 = vmatmul.msk.f32.gmra.mxu3 %vm155_vm4, %v1495_v63  ;;  %v2076_v63 = vld [vmem:[%s2818_s6 + $0x50] sm:$0xff] }
0x108f   :  { %1815 = vmatpush.msrb.mxu3 %v2076_v63 }
0x1091   :  { %1816 = vmatpush.msrb.mxu3 %v2075_v12 }
0x1093   :  { %v1634_v14 = vpop.permute.xlu0 %1633 }
0x1094   :  { %1654 = vmatpush.msra.mxu1 %v1634_v14 }
0x1095   :  { %v1630_v6 = vpop.f32.mrf.mxu2  ;;  %2064 = vmatmul.msk.f32.vlgmr.msra.gmra.mxu1 %vm155_vm4, %v1606_v13  ;;  %v2074_v13 = vld [vmem:[%s2818_s6 + $0x40] sm:$0xff] }
0x1096   :  { %2065 = vmatmul.msk.f32.vlgmr.msra.gmra.mxu0 %vm155_vm4, %v1630_v6  ;;  %1817 = vmatpush.msrb.mxu3 %v2074_v13 }
0x1111   :  { %v1524_v28 = vpop.f32.mrf.mxu3 }
0x1112   :  { %v1656_v18 = vpop.f32.mrf.mxu1  ;;  %v1528_v33 = vadd.f32 %v1524_v28, %v1366_v30 }
0x1113   :  { %v1682_v22 = vpop.f32.mrf.mxu0  ;;  %2066 = vmatmul.msk.f32.gmra.mxu0 %vm155_vm4, %v1656_v18 }
0x1114   :  { %v1688_v24 = vadd.f32 %v1682_v22, %v1527_v17 }
0x1116   :  { %v1691_v25 = vadd.f32 %v1690_v21, %v1688_v24  ;;  %v2108_v24 = vld [vmem:[%s2820_s8 + $0x1] ss:$0 sm:$0xff] }
0x1118   :  { %v1693_v26 = vadd.f32 %v1691_v25, %v2575_v31 }
0x111a   :  { %v1695_v27 = vsel %vm103_vm3, %v1693_v26, 0.0 }
0x111b   :  { %1696 = vadd.xlane.f32.xlu2 %v1695_v27 }
0x118e   :  { %v1697_v32 = vpop.xlane.xlu2 %1696 }
0x118f   :  { %v1701_v34 = vmul.f32 %v1697_v32, %v2488_v1 }
0x1190   :  { %v1685_v37 = vpop.f32.mrf.mxu0 }
0x1191   :  { %v1703_v55 = vsub.f32 %v1693_v26, %v1701_v34  ;;  %v1689_v38 = vadd.f32 %v1685_v37, %v1528_v33  ;;  %v1795_v33 = vperm.slane %v2564_v39, 6 }
0x1193   :  { %v1692_v40 = vadd.f32 %v1690_v21, %v1689_v38  ;;  %v1705_v42 = vmul.f32 %v1703_v55, %v1703_v55 }
0x1195   :  { %v1707_v29 = vsel %vm103_vm3, %v1705_v42, 0.0  ;;  %v1694_v43 = vadd.f32 %v1692_v40, %v2591_v2  ;;  %v2067_v2 = vld [vmem:[%s2817_s5 + $0x20] sm:$0xff] }
0x1196   :  { %1708 = vadd.xlane.f32.xlu0 %v1707_v29  ;;  %1776 = vmatpush.msra.mxu2 %v2067_v2 }
0x1197   :  { %v1698_v31 = vsel %vm103_vm3, %v1694_v43, 0.0 }
0x1198   :  { %1699 = vadd.xlane.f32.xlu1 %v1698_v31 }
0x1209   :  { %v1709_v47 = vpop.xlane.xlu0 %1708 }
0x120a   :  { %v1713_v19 = vmul.f32 %v1709_v47, %v2488_v1 }
0x120b   :  { %v1700_v16 = vpop.xlane.xlu1 %1699 }
0x120c   :  { %v1715_v48 = vadd.f32 1e-05, %v1713_v19  ;;  %v1702_v49 = vmul.f32 %v1700_v16, %v2488_v1 }
0x120e   :  { %2184 = vrsqrt.f32 %v1715_v48  ;;  %v1704_v50 = vsub.f32 %v1694_v43, %v1702_v49  ;;  %vm1723_vm7 = vweird.f32 %v1715_v48 }
0x1210   :  { %v1706_v51 = vmul.f32 %v1704_v50, %v1704_v50 }
0x1212   :  { %v1710_v52 = vsel %vm103_vm3, %v1706_v51, 0.0 }
0x1213   :  { %1711 = vadd.xlane.f32.xlu2 %v1710_v52 }
0x1214   :  { %v2185_v54 = vpop.eup %2184 }
0x1215   :  { %v1718_v56 = vmul.f32 %v2185_v54, %v1715_v48  ;;  %vm1724_vm4 = vweird.f32 %v2185_v54 }
0x1216   :  { %vm1725_vm8 = vmor %vm1723_vm7, %vm1724_vm4 }
0x1217   :  { %v1719_v35 = vmul.f32 %v2185_v54, %v1718_v56 }
0x1219   :  { %v1720_v58 = vmul.f32 0.5, %v1719_v35 }
0x121b   :  { %v1721_v59 = vsub.f32 1.5, %v1720_v58 }
0x121d   :  { %v1722_v60 = vmul.f32 %v2185_v54, %v1721_v59 }
0x121f   :  { %v1726_v53 = vsel %vm1725_vm8, %v2185_v54, %v1722_v60 }
0x1220   :  { %v1737_v0 = vmul.f32 %v1726_v53, %v1703_v55 }
0x1222   :  { %v1740_v20 = vmul.f32 %v1739_v62, %v1737_v0 }
0x1224   :  { %v1743_v4 = vadd.f32 %v1742_v3, %v1740_v20 }
0x1226   :  { %2072 = vmatmul.msk.f32.vlgmr.msra.gmra.mxu2 %vm103_vm3, %v1743_v4 }
0x1286   :  { %v1712_v10 = vpop.xlane.xlu2 %1711 }
0x1287   :  { %v1714_v11 = vmul.f32 %v1712_v10, %v2488_v1 }
0x1289   :  { %v1716_v61 = vadd.f32 1e-05, %v1714_v11 }
0x128b   :  { %2186 = vrsqrt.f32 %v1716_v61  ;;  %vm1733_vm11 = vweird.f32 %v1716_v61 }
0x1291   :  { %v2187_v14 = vpop.eup %2186 }
0x1292   :  { %v1728_v6 = vmul.f32 %v2187_v14, %v1716_v61  ;;  %vm1734_vm9 = vweird.f32 %v2187_v14 }
0x1293   :  { %vm1735_vm12 = vmor %vm1733_vm11, %vm1734_vm9 }
0x1294   :  { %v1729_v36 = vmul.f32 %v2187_v14, %v1728_v6 }
0x1296   :  { %v1730_v15 = vmul.f32 0.5, %v1729_v36 }
0x1298   :  { %v1731_v57 = vsub.f32 1.5, %v1730_v15 }
0x129a   :  { %v1732_v23 = vmul.f32 %v2187_v14, %v1731_v57 }
0x129c   :  { %v1736_v17 = vsel %vm1735_vm12, %v2187_v14, %v1732_v23 }
0x129d   :  { %v1738_v18 = vmul.f32 %v1736_v17, %v1704_v50 }
0x129f   :  { %v1741_v21 = vmul.f32 %v1739_v62, %v1738_v18  ;;  %v1871_v62 = vperm.slane %v2564_v39, 7 }
0x12a1   :  { %v1744_v22 = vadd.f32 %v1742_v3, %v1741_v21  ;;  %v2109_v3 = vld [vmem:[%s2819_s7 + $0x18] ss:$0 sm:$0xff] }
0x12a2   :  { %v1931_v21 = vld [vmem:[%s2822_s10 + $0x18] sm:$0xff] }
0x12a3   :  { %2073 = vmatmul.msk.f32.gmra.mxu2 %vm103_vm3, %v1744_v22  ;;  %1950 = vmatpush.msrb.mxu1 %v1931_v21 }
0x12a9   :  { %v1778_v25 = vpop.f32.mrf.mxu2 }
0x12aa   :  { %v1779_v26 = vadd.f32 %v2108_v24, %v1778_v25  ;;  %v1928_v25 = vld [vmem:[%s2822_s10] sm:$0xff] }
0x12ac   :  { %v1784_v27 = vmax.f32 %v1779_v26, 0.0 }
0x12ae   :  { %2082 = vmatmul.msk.f32.vlgmr.msrb.gmra.mxu3 %vm905_vm10, %v1784_v27 }
0x1326   :  { %v1781_v28 = vpop.f32.mrf.mxu2 }
0x1327   :  { %v1782_v30 = vadd.f32 %v2108_v24, %v1781_v28  ;;  %v1929_v24 = vld [vmem:[%s2822_s10 + $0x8] sm:$0xff] }
0x1329   :  { %v1785_v32 = vmax.f32 %v1782_v30, 0.0 }
0x132b   :  { %2083 = vmatmul.msk.f32.gmra.mxu3 %vm905_vm10, %v1785_v32 }
0x1331   :  { %v1819_v34 = vpop.f32.mrf.mxu3 }
0x1332   :  { %v1820_v37 = vadd.f32 %v1819_v34, %v1795_v33 }
0x1334   :  { %v1825_v55 = vadd.f32 %v1820_v37, %v1743_v4 }
0x1336   :  { %v1827_v38 = vsel %vm103_vm3, %v1825_v55, 0.0 }
0x1337   :  { %1828 = vadd.xlane.f32.xlu1 %v1827_v38 }
0x13aa   :  { %v1829_v40 = vpop.xlane.xlu1 %1828 }
0x13ab   :  { %v1833_v42 = vmul.f32 %v1829_v40, %v2488_v1 }
0x13ad   :  { %v1835_v29 = vsub.f32 %v1825_v55, %v1833_v42 }
0x13ae   :  { %v1822_v43 = vpop.f32.mrf.mxu3 }
0x13af   :  { %v1823_v31 = vadd.f32 %v1822_v43, %v1795_v33  ;;  %v1837_v41 = vmul.f32 %v1835_v29, %v1835_v29 }
0x13b1   :  { %v1839_v44 = vsel %vm103_vm3, %v1837_v41, 0.0  ;;  %v1826_v46 = vadd.f32 %v1823_v31, %v1744_v22  ;;  %v1930_v22 = vld [vmem:[%s2822_s10 + $0x10] sm:$0xff] }
0x13b2   :  { %1840 = vadd.xlane.f32.xlu0 %v1839_v44  ;;  %1951 = vmatpush.msrb.mxu1 %v1930_v22 }
0x13b3   :  { %v1830_v2 = vsel %vm103_vm3, %v1826_v46, 0.0 }
0x13b4   :  { %1831 = vadd.xlane.f32.xlu2 %v1830_v2  ;;  %1952 = vmatpush.msrb.mxu1 %v1929_v24 }
0x13b6   :  { %1953 = vmatpush.msrb.mxu1 %v1928_v25 }
0x1425   :  { %v1841_v47 = vpop.xlane.xlu0 %1840 }
0x1426   :  { %v1845_v19 = vmul.f32 %v1841_v47, %v2488_v1 }
0x1427   :  { %v1832_v16 = vpop.xlane.xlu2 %1831 }
0x1428   :  { %v1847_v48 = vadd.f32 1e-05, %v1845_v19  ;;  %v1834_v49 = vmul.f32 %v1832_v16, %v2488_v1 }
0x142a   :  { %2188 = vrsqrt.f32 %v1847_v48  ;;  %v1836_v50 = vsub.f32 %v1826_v46, %v1834_v49  ;;  %vm1855_vm13 = vweird.f32 %v1847_v48 }
0x142c   :  { %v1838_v51 = vmul.f32 %v1836_v50, %v1836_v50 }
0x142e   :  { %v1842_v52 = vsel %vm103_vm3, %v1838_v51, 0.0 }
0x142f   :  { %1843 = vadd.xlane.f32.xlu1 %v1842_v52 }
0x1430   :  { %v2189_v54 = vpop.eup %2188 }
0x1431   :  { %v1850_v56 = vmul.f32 %v2189_v54, %v1847_v48  ;;  %vm1856_vm10 = vweird.f32 %v2189_v54 }
0x1432   :  { %vm1857_vm14 = vmor %vm1855_vm13, %vm1856_vm10 }
0x1433   :  { %v1851_v35 = vmul.f32 %v2189_v54, %v1850_v56 }
0x1435   :  { %v1852_v58 = vmul.f32 0.5, %v1851_v35 }
0x1437   :  { %v1853_v59 = vsub.f32 1.5, %v1852_v58 }
0x1439   :  { %v1854_v60 = vmul.f32 %v2189_v54, %v1853_v59 }
0x143b   :  { %v1858_v53 = vsel %vm1857_vm14, %v2189_v54, %v1854_v60 }
0x143c   :  { %v1869_v0 = vmul.f32 %v1858_v53, %v1835_v29  ;;  %v1877_v29 = vld [vmem:[%s2821_s9] sm:$0x3]  ;;  %s2238_s9 = smov [#allocation2]  }
0x143d   :  { %v1922_v41 = vperm.slane %v1877_v29, 0  ;;  %v1925_v2 = vperm.slane %v1877_v29, 1  ;;  %s1967_s17 = sshll.u32 %s2238_s9, 4  ;;  %s1968_s17 = int_to_ptr.vmem [resolvable:$true] %s1967_s17 }
0x143e   :  { %v1872_v20 = vmul.f32 %v1871_v62, %v1869_v0 }
0x1440   :  { %v1875_v4 = vadd.f32 %v2109_v3, %v1872_v20 }
0x1442   :  { %v1878_v5 = vsel %vm103_vm3, %v1875_v4, 0.0 }
0x1443   :  { %1879 = vadd.xlane.f32.xlu2 %v1878_v5 }
0x14a2   :  { %v1844_v7 = vpop.xlane.xlu1 %1843 }
0x14a3   :  { %v1846_v45 = vmul.f32 %v1844_v7, %v2488_v1 }
0x14a5   :  { %v1848_v8 = vadd.f32 1e-05, %v1846_v45 }
0x14a7   :  { %2190 = vrsqrt.f32 %v1848_v8  ;;  %vm1865_vm1 = vweird.f32 %v1848_v8 }
0x14ad   :  { %v2191_v9 = vpop.eup %2190 }
0x14ae   :  { %v1860_v10 = vmul.f32 %v2191_v9, %v1848_v8  ;;  %vm1866_vm15 = vweird.f32 %v2191_v9 }
0x14af   :  { %vm1867_vm2 = vmor %vm1865_vm1, %vm1866_vm15 }
0x14b0   :  { %v1861_v11 = vmul.f32 %v2191_v9, %v1860_v10 }
0x14b2   :  { %v1862_v39 = vmul.f32 0.5, %v1861_v11 }
0x14b4   :  { %v1863_v61 = vsub.f32 1.5, %v1862_v39 }
0x14b6   :  { %v1864_v63 = vmul.f32 %v2191_v9, %v1863_v61  ;;  %v1880_v12 = vpop.xlane.xlu2 %1879 }
0x14b7   :  { %v1884_v13 = vmul.f32 %v1880_v12, %v2488_v1 }
0x14b8   :  { %v1868_v14 = vsel %vm1867_vm2, %v2191_v9, %v1864_v63 }
0x14b9   :  { %v1886_v6 = vsub.f32 %v1875_v4, %v1884_v13  ;;  %v1870_v36 = vmul.f32 %v1868_v14, %v1836_v50 }
0x14bb   :  { %v1888_v15 = vmul.f32 %v1886_v6, %v1886_v6  ;;  %v1873_v57 = vmul.f32 %v1871_v62, %v1870_v36 }
0x14bd   :  { %v1890_v23 = vsel %vm103_vm3, %v1888_v15, 0.0  ;;  %v1876_v17 = vadd.f32 %v2109_v3, %v1873_v57 }
0x14be   :  { %1891 = vadd.xlane.f32.xlu1 %v1890_v23 }
0x14bf   :  { %v1881_v18 = vsel %vm103_vm3, %v1876_v17, 0.0 }
0x14c0   :  { %1882 = vadd.xlane.f32.xlu0 %v1881_v18 }
0x1531   :  { %v1892_v26 = vpop.xlane.xlu1 %1891 }
0x1532   :  { %v1896_v27 = vmul.f32 %v1892_v26, %v2488_v1 }
0x1533   :  { %v1883_v28 = vpop.xlane.xlu0 %1882 }
0x1534   :  { %v1898_v30 = vadd.f32 1e-05, %v1896_v27  ;;  %v1885_v32 = vmul.f32 %v1883_v28, %v2488_v1 }
0x1536   :  { %2192 = vrsqrt.f32 %v1898_v30  ;;  %v1887_v33 = vsub.f32 %v1876_v17, %v1885_v32  ;;  %vm1906_vm6 = vweird.f32 %v1898_v30 }
0x1538   :  { %v1889_v34 = vmul.f32 %v1887_v33, %v1887_v33 }
0x153a   :  { %v1893_v37 = vsel %vm103_vm3, %v1889_v34, 0.0 }
0x153b   :  { %1894 = vadd.xlane.f32.xlu2 %v1893_v37 }
0x153c   :  { %v2193_v55 = vpop.eup %2192 }
0x153d   :  { %v1901_v38 = vmul.f32 %v2193_v55, %v1898_v30  ;;  %vm1907_vm5 = vweird.f32 %v2193_v55 }
0x153e   :  { %vm1908_vm4 = vmor %vm1906_vm6, %vm1907_vm5 }
0x153f   :  { %v1902_v40 = vmul.f32 %v2193_v55, %v1901_v38 }
0x1541   :  { %v1903_v42 = vmul.f32 0.5, %v1902_v40 }
0x1543   :  { %v1904_v43 = vsub.f32 1.5, %v1903_v42 }
0x1545   :  { %v1905_v31 = vmul.f32 %v2193_v55, %v1904_v43 }
0x1547   :  { %v1909_v44 = vsel %vm1908_vm4, %v2193_v55, %v1905_v31 }
0x1548   :  { %v1920_v46 = vmul.f32 %v1909_v44, %v1886_v6 }
0x154a   :  { %v1923_v47 = vmul.f32 %v1922_v41, %v1920_v46 }
0x154c   :  { %v1926_v19 = vadd.f32 %v1925_v2, %v1923_v47 }
0x154e   :  { %2084 = vmatmul.msk.f32.vlgmr.msrb.gmra.mxu1 %vm103_vm3, %v1926_v19 }
0x15ae   :  { %v1895_v16 = vpop.xlane.xlu2 %1894 }
0x15af   :  { %v1897_v48 = vmul.f32 %v1895_v16, %v2488_v1 }
0x15b1   :  { %v1899_v49 = vadd.f32 1e-05, %v1897_v48 }
0x15b3   :  { %2194 = vrsqrt.f32 %v1899_v49  ;;  %vm1916_vm8 = vweird.f32 %v1899_v49 }
0x15b9   :  { %v2195_v50 = vpop.eup %2194 }
0x15ba   :  { %v1911_v51 = vmul.f32 %v2195_v50, %v1899_v49  ;;  %vm1917_vm7 = vweird.f32 %v2195_v50 }
0x15bb   :  { %vm1918_vm9 = vmor %vm1916_vm8, %vm1917_vm7 }
0x15bc   :  { %v1912_v52 = vmul.f32 %v2195_v50, %v1911_v51 }
0x15be   :  { %v1913_v54 = vmul.f32 0.5, %v1912_v52 }
0x15c0   :  { %v1914_v56 = vsub.f32 1.5, %v1913_v54 }
0x15c2   :  { %v1915_v35 = vmul.f32 %v2195_v50, %v1914_v56 }
0x15c4   :  { %v1919_v58 = vsel %vm1918_vm9, %v2195_v50, %v1915_v35 }
0x15c5   :  { %v1921_v59 = vmul.f32 %v1919_v58, %v1887_v33 }
0x15c7   :  { %v1924_v60 = vmul.f32 %v1922_v41, %v1921_v59 }
0x15c9   :  { %v1927_v62 = vadd.f32 %v1925_v2, %v1924_v60 }
0x15cb   :  { %v1955_v53 = vpop.f32.mrf.mxu1  ;;  %2085 = vmatmul.msk.f32.gmra.mxu1 %vm103_vm3, %v1927_v62 }
0x15cc   :  { %1961 = vst.msk [vmem:[#allocation2] sm:$0xff] %vm59_vm0, %v1955_v53 }
0x1648   :  { %v1958_v1 = vpop.f32.mrf.mxu1 }
0x1649   :  { %1962 = vst.msk [vmem:[#allocation2 + $0x8] sm:$0xff] %vm59_vm0, %v1958_v1 }
0x164a   :  { %1975 = dma.vmem_to_hbm [thread:$0]  %s1968_s17, 256, %s1970_s27, [#allocation3], %s2239_s0, %s2239_s0, %s2240_s2  }
0x164b   :  { %2220 = dma.done.wait [#allocation3], 256  }
0x164c   :  { %2221 = vsyncadd [#allocation3], 4294967040 }
0x164d   :  { %1980 = vsyncpa [#allocation3], 1 }

</bundles_post_ra>
